<compile_context>
chip_gen: v5e
topology: v5e:2x2
jax: 0.10.0
libtpu: 0.0.40
codegen_flags: <defaults>
</compile_context>

<pallas_src>
from functools import partial

import jax
import jax.numpy as jnp
from jax import lax
from jax.experimental import pallas as pl
from jax.experimental.pallas import tpu as pltpu

_LP = jnp.bfloat16     # low-precision MXU operand dtype (f32 accumulation)


def _round_up(x, m):
    return ((x + m - 1) // m) * m


def gat_kernel(keyin_ref, src_ref, mask_ref, ew_ref,
               wt_ref, bte_ref, wq_ref, bq_ref, wk_ref, bk_ref, wv_ref, bv_ref,
               pool_ref, nsp_ref, dmat_ref, spreadv_ref, woc_ref, bo_ref,
               w1a_ref, w1b_ref, b1_ref, w2_ref, b2_ref,
               out_ref):
    f32 = jnp.float32
    lp = _LP

    src = src_ref[...]                     # (TB, E)    bf16
    mask = mask_ref[...]                   # (TB, N)    f32, 1.0 = padded
    ew = ew_ref[...]                       # (TB, N)    f32 edge weights

    # ---- invalid-neighborhood fix-up: fully padded rows attend to slot 0 ----
    invalid = jnp.min(mask, axis=-1, keepdims=True)            # (TB,1) 1.0 iff all padded
    col0 = lax.broadcasted_iota(jnp.int32, mask.shape, 1) == 0
    mask_fixed = jnp.where(col0 & (invalid > 0.5), 0.0, mask)

    # ---- key = transform(cat([ngh, edge, time])) * ew  (ew folded into keyin
    #      in the wrapper; only the bias needs the per-neighbor scale) ---------
    key = jnp.dot(keyin_ref[...], wt_ref[...], preferred_element_type=f32)
    key = key + jnp.dot(ew.astype(lp), bte_ref[...], preferred_element_type=f32)
    key = key.astype(lp)                                        # (TB, N*E)

    # ---- projections (neighbor-blocked along lanes) --------------------------
    q = jnp.dot(src, wq_ref[...], preferred_element_type=f32) + bq_ref[...]   # (TB, N*E)  q/sqrt(D), tiled over n
    k = jnp.dot(key, wk_ref[...], preferred_element_type=f32) + bk_ref[...]   # (TB, N*E)
    v = jnp.dot(key, wv_ref[...], preferred_element_type=f32) + bv_ref[...]   # (TB, N*E)

    # ---- scores[b, n*H+h] = sum_d q_h[b,d] k[b,n,h*D+d]   (lane-dense) -------
    s = jnp.dot((q * k).astype(lp), pool_ref[...], preferred_element_type=f32)  # (TB, N*H)
    s = s + jnp.dot(mask_fixed.astype(lp), nsp_ref[...],
                    preferred_element_type=f32) * jnp.float32(-1e30)

    # ---- softmax over n per head (row max is a valid shift for every head) ---
    m = jnp.max(s, axis=-1, keepdims=True)
    p = jnp.exp(s - m)
    denom = jnp.dot(p.astype(lp), dmat_ref[...], preferred_element_type=f32)   # per-head sum, spread back
    p = p * pl.reciprocal(denom, approx=False)                  # (TB, N*H)

    # ---- context: spread p over value lanes; the sum over n and the
    #      out-projection are folded into one (N*E, E) matmul -----------------
    pv = jnp.dot(p.astype(lp), spreadv_ref[...], preferred_element_type=f32) * v
    attn = jnp.dot(pv.astype(lp), woc_ref[...], preferred_element_type=f32) + bo_ref[...]
    attn = jnp.where(invalid > 0.5, 0.0, attn)                  # masked_fill(invalid, 0)
    attn = jnp.maximum(attn, 0.0)                               # ReLU

    # ---- MergeLayer fc2(relu(fc1(cat([attn, src])))) without the concat ------
    hdn = jnp.dot(attn.astype(lp), w1a_ref[...], preferred_element_type=f32)
    hdn = hdn + jnp.dot(src, w1b_ref[...], preferred_element_type=f32)
    hdn = jnp.maximum(hdn + b1_ref[...], 0.0)
    out = jnp.dot(hdn.astype(lp), w2_ref[...], preferred_element_type=f32) + b2_ref[...]
    out_ref[...] = out.astype(out_ref.dtype)


def _vmem_limit_bytes():
    try:
        cap = int(pltpu.get_tpu_info().vmem_capacity_bytes)
    except Exception:
        cap = 64 << 20          # conservative: v7x per-TensorCore physical VMEM
    return max(min(cap * 3 // 4, 96 << 20), 32 << 20)


@partial(jax.jit, static_argnames=("n_head", "out_dim", "block_rows"))
def gat_layer_forward(src, ngh, time_feat, edge_feat, pad_mask, weights, params,
                      *, n_head, out_dim, block_rows=512):
    f32 = jnp.float32
    lp = _LP
    B, N, Fn = ngh.shape
    Fe = edge_feat.shape[-1]
    Ft = time_feat.shape[-1]
    Kin = Fn + Fe + Ft
    E = src.shape[-1]
    H = n_head
    D = E // H

    # ---- row tile: as big as the VMEM budget allows, but keep a >=2-step grid
    vmem_limit = _vmem_limit_bytes()
    per_row = (2 * (N * Kin * 2 + 2 * 128 + 2 * 128 * 4 + 128 * 4)   # dbl-buffered, lane-padded IO
               + 10 * N * E * 4)                                     # f32 intermediates
    tb = min(block_rows, max(8, (vmem_limit // 2) // per_row))
    tb = max(8, (tb // 8) * 8)
    tb = min(tb, _round_up(B, 8))
    half = _round_up(B, 16) // 2
    if half >= 8:
        tb = min(tb, half)       # >=2-step "parallel" grid -> both v7x TensorCores
    B_pad = _round_up(B, tb)

    def pad_rows(x, fill=0.0):
        if x.shape[0] == B_pad:
            return x
        widths = [(0, B_pad - x.shape[0])] + [(0, 0)] * (x.ndim - 1)
        return jnp.pad(x, widths, constant_values=fill)

    # ---- activations: concat + edge-weight scale fused into the bf16 cast the
    #      wrapper already does; (B,N,K)->(B,N*K) reshape is free --------------
    ewf = weights.astype(f32)
    keyin = jnp.concatenate([ngh.astype(f32), edge_feat.astype(f32),
                             time_feat.astype(f32)], axis=2) * ewf[:, :, None]
    keyin = pad_rows(keyin).astype(lp).reshape(B_pad, N * Kin)
    src_p = pad_rows(src.astype(f32)).astype(lp)
    maskf = pad_rows(pad_mask.astype(f32), fill=1.0)      # padded rows -> "invalid"
    ewp = pad_rows(ewf)

    # ---- parameters: pre-transposed / neighbor-blocked / head-select matrices
    eyeN = jnp.eye(N, dtype=f32)
    head_sel = (jnp.arange(E)[:, None] // D ==
                jnp.arange(H)[None, :]).astype(f32)                    # (E, H)
    scale = 1.0 / float(D) ** 0.5

    Wt = jnp.asarray(params["Wt"], f32)
    W1 = jnp.asarray(params["W1"], f32)

    def row(x):
        return jnp.asarray(x, f32).reshape(1, -1)

    param_args = (
        jnp.kron(eyeN, Wt.T).astype(lp),                                      # wt_blk  (N*Kin, N*E)
        jnp.kron(eyeN, row(params["bt"])).astype(lp),                         # bte     (N, N*E)  bt per-neighbor
        jnp.tile(jnp.asarray(params["Wq"], f32).T * scale, (1, N)).astype(lp),# wq_t    (E, N*E)
        jnp.tile(row(params["bq"]) * scale, (1, N)),                          # bq_t    (1, N*E) f32
        jnp.kron(eyeN, jnp.asarray(params["Wk"], f32).T).astype(lp),          # wk_blk  (N*E, N*E)
        jnp.tile(row(params["bk"]), (1, N)),                                  # bk_t    f32
        jnp.kron(eyeN, jnp.asarray(params["Wv"], f32).T).astype(lp),          # wv_blk
        jnp.tile(row(params["bv"]), (1, N)),                                  # bv_t    f32
        jnp.kron(eyeN, head_sel).astype(lp),                                  # pool    (N*E, N*H)
        jnp.kron(eyeN, jnp.ones((1, H), f32)).astype(lp),                     # nsp     (N, N*H)  mask spread
        jnp.tile(jnp.eye(H, dtype=f32), (N, N)).astype(lp),                   # dmat    (N*H, N*H) per-head sum
        jnp.kron(eyeN, head_sel.T).astype(lp),                                # spreadv (N*H, N*E)
        jnp.tile(jnp.asarray(params["Wo"], f32).T, (N, 1)).astype(lp),        # woc     (N*E, E)  sum_n + Wo
        row(params["bo"]),                                                    # bo      f32
        W1[:, :E].T.astype(lp),                                               # w1a     (E, F1)
        W1[:, E:].T.astype(lp),                                               # w1b     (E, F1)
        row(params["b1"]),                                                    # b1      f32
        jnp.asarray(params["W2"], f32).T.astype(lp),                          # w2t     (F1, out)
        row(params["b2"]),                                                    # b2      f32
    )

    act_specs = [
        pl.BlockSpec((tb, N * Kin), lambda i: (i, 0)),
        pl.BlockSpec((tb, E), lambda i: (i, 0)),
        pl.BlockSpec((tb, N), lambda i: (i, 0)),
        pl.BlockSpec((tb, N), lambda i: (i, 0)),
    ]
    # constant block index -> parameters stay VMEM-resident across grid steps
    param_specs = [pl.BlockSpec(a.shape, lambda i: (0, 0)) for a in param_args]

    out = pl.pallas_call(
        gat_kernel,
        out_shape=jax.ShapeDtypeStruct((B_pad, out_dim), jnp.float32),
        grid=(B_pad // tb,),
        in_specs=act_specs + param_specs,
        out_specs=pl.BlockSpec((tb, out_dim), lambda i: (i, 0)),
        compiler_params=pltpu.CompilerParams(
            dimension_semantics=("parallel",),
            vmem_limit_bytes=vmem_limit),
    )(keyin, src_p, maskf, ewp, *param_args)
    return out[:B]


def gat_layer_reference(src, ngh, time_feat, edge_feat, pad_mask, weights, params,
                        *, n_head):
    """Pure-JAX f32 reference of the same math (for correctness check)."""
    E = src.shape[1]
    D = E // n_head
    key = jnp.concatenate([ngh, edge_feat, time_feat], axis=2)
    key = jnp.einsum("bnk,fk->bnf", key, params["Wt"]) + params["bt"]
    key = key * weights[:, :, None]

    invalid = jnp.all(pad_mask, axis=1, keepdims=True)
    mask = pad_mask.at[:, 0].set(jnp.where(invalid[:, 0], False, pad_mask[:, 0]))

    q = src @ params["Wq"].T + params["bq"]
    k = jnp.einsum("bnf,ef->bne", key, params["Wk"]) + params["bk"]
    v = jnp.einsum("bnf,ef->bne", key, params["Wv"]) + params["bv"]

    outs = []
    for h in range(n_head):
        q_h = q[:, h * D:(h + 1) * D]
        k_h = k[:, :, h * D:(h + 1) * D]
        v_h = v[:, :, h * D:(h + 1) * D]
        s = jnp.einsum("bd,bnd->bn", q_h, k_h) / jnp.sqrt(float(D))
        s = jnp.where(mask, -1e30, s)
        p = jax.nn.softmax(s, axis=-1)
        outs.append(jnp.einsum("bn,bnd->bd", p, v_h))
    attn = jnp.concatenate(outs, axis=-1) @ params["Wo"].T + params["bo"]
    attn = jnp.where(invalid, 0.0, attn)
    attn = jax.nn.relu(attn)
    x = jnp.concatenate([attn, src], axis=1)
    h1 = jax.nn.relu(x @ params["W1"].T + params["b1"])
    return h1 @ params["W2"].T + params["b2"]


if __name__ == "__main__":
    # Small shapes consistent with the module; B=16 auto-tiles to TB=8 -> 2-step grid.
    B, N = 16, 8
    n_node_features = 32          # = feat_dim = query_dim = embed_dim
    n_neighbors_features = 32
    n_edge_features = 16
    time_dim = 16
    output_dimension = 32
    n_head = 2
    E = n_node_features
    key_dim = n_neighbors_features + n_edge_features + time_dim   # 64

    key = jax.random.PRNGKey(0)
    ks = jax.random.split(key, 24)

    def init(k, shape, scale=0.1):
        return (scale * jax.random.normal(k, shape)).astype(jnp.float32)

    params = {
        # transform: Linear(key_dim -> feat_dim)
        "Wt": init(ks[0], (E, key_dim)), "bt": init(ks[1], (E,)),
        # MultiheadAttention projections (embed=kdim=vdim=E)
        "Wq": init(ks[2], (E, E)), "bq": init(ks[3], (E,)),
        "Wk": init(ks[4], (E, E)), "bk": init(ks[5], (E,)),
        "Wv": init(ks[6], (E, E)), "bv": init(ks[7], (E,)),
        "Wo": init(ks[8], (E, E)), "bo": init(ks[9], (E,)),
        # MergeLayer: fc1(query_dim + feat -> feat), fc2(feat -> out_dim)
        "W1": init(ks[10], (n_node_features, 2 * E)), "b1": init(ks[11], (n_node_features,)),
        "W2": init(ks[12], (output_dimension, n_node_features)),
        "b2": init(ks[13], (output_dimension,)),
    }

    src = init(ks[14], (B, n_node_features), 1.0)
    ngh = init(ks[15], (B, N, n_neighbors_features), 1.0)
    tfe = init(ks[16], (B, N, time_dim), 1.0)
    efe = init(ks[17], (B, N, n_edge_features), 1.0)
    weights = jax.random.uniform(ks[18], (B, N), dtype=jnp.float32)
    pad_mask = jax.random.bernoulli(ks[19], 0.3, (B, N))
    pad_mask = pad_mask.at[3, :].set(True)    # fully-padded row in grid tile 0
    pad_mask = pad_mask.at[11, :].set(True)   # fully-padded row in grid tile 1

    out = gat_layer_forward(src, ngh, tfe, efe, pad_mask, weights, params,
                            n_head=n_head, out_dim=output_dimension)
    out = jax.block_until_ready(out)

    ref = gat_layer_reference(src, ngh, tfe, efe, pad_mask, weights, params,
                              n_head=n_head)
    assert out.shape == (B, output_dimension)
    # bf16 MXU operands -> loosened (but tight) tolerance.
    assert jnp.allclose(out, ref, atol=2e-2, rtol=2e-2), "mismatch vs JAX reference"
    print("KERNEL_OK")
</pallas_src>

<mosaic_0001>
module attributes {stable_mosaic.version = 11 : i64} {
  func.func @gat_kernel(%arg0: i32, %arg1: memref<8x512xbf16, #tpu.memory_space<vmem>>, %arg2: memref<8x32xbf16, #tpu.memory_space<vmem>>, %arg3: memref<8x8xf32, #tpu.memory_space<vmem>>, %arg4: memref<8x8xf32, #tpu.memory_space<vmem>>, %arg5: memref<512x256xbf16, #tpu.memory_space<vmem>>, %arg6: memref<8x256xbf16, #tpu.memory_space<vmem>>, %arg7: memref<32x256xbf16, #tpu.memory_space<vmem>>, %arg8: memref<1x256xf32, #tpu.memory_space<vmem>>, %arg9: memref<256x256xbf16, #tpu.memory_space<vmem>>, %arg10: memref<1x256xf32, #tpu.memory_space<vmem>>, %arg11: memref<256x256xbf16, #tpu.memory_space<vmem>>, %arg12: memref<1x256xf32, #tpu.memory_space<vmem>>, %arg13: memref<256x16xbf16, #tpu.memory_space<vmem>>, %arg14: memref<8x16xbf16, #tpu.memory_space<vmem>>, %arg15: memref<16x16xbf16, #tpu.memory_space<vmem>>, %arg16: memref<16x256xbf16, #tpu.memory_space<vmem>>, %arg17: memref<256x32xbf16, #tpu.memory_space<vmem>>, %arg18: memref<1x32xf32, #tpu.memory_space<vmem>>, %arg19: memref<32x32xbf16, #tpu.memory_space<vmem>>, %arg20: memref<32x32xbf16, #tpu.memory_space<vmem>>, %arg21: memref<1x32xf32, #tpu.memory_space<vmem>>, %arg22: memref<32x32xbf16, #tpu.memory_space<vmem>>, %arg23: memref<1x32xf32, #tpu.memory_space<vmem>>, %arg24: memref<8x32xf32, #tpu.memory_space<vmem>>) attributes {dimension_semantics = [#tpu.dimension_semantics<parallel>], iteration_bounds = array<i64: 2>, scalar_prefetch = 0 : i64, scratch_operands = 0 : i64, tpu.core_type = #tpu.core_type<tc>, window_params = [{transform_indices = @transform_0, window_bounds = array<i64: 8, 512>}, {transform_indices = @transform_1, window_bounds = array<i64: 8, 32>}, {transform_indices = @transform_2, window_bounds = array<i64: 8, 8>}, {transform_indices = @transform_3, window_bounds = array<i64: 8, 8>}, {pipeline_mode = #tpu.pipeline_mode<synchronous>, transform_indices = @transform_4, window_bounds = array<i64: 512, 256>}, {pipeline_mode = #tpu.pipeline_mode<synchronous>, transform_indices = @transform_5, window_bounds = array<i64: 8, 256>}, {pipeline_mode = #tpu.pipeline_mode<synchronous>, transform_indices = @transform_6, window_bounds = array<i64: 32, 256>}, {pipeline_mode = #tpu.pipeline_mode<synchronous>, transform_indices = @transform_7, window_bounds = array<i64: 1, 256>}, {pipeline_mode = #tpu.pipeline_mode<synchronous>, transform_indices = @transform_8, window_bounds = array<i64: 256, 256>}, {pipeline_mode = #tpu.pipeline_mode<synchronous>, transform_indices = @transform_9, window_bounds = array<i64: 1, 256>}, {pipeline_mode = #tpu.pipeline_mode<synchronous>, transform_indices = @transform_10, window_bounds = array<i64: 256, 256>}, {pipeline_mode = #tpu.pipeline_mode<synchronous>, transform_indices = @transform_11, window_bounds = array<i64: 1, 256>}, {pipeline_mode = #tpu.pipeline_mode<synchronous>, transform_indices = @transform_12, window_bounds = array<i64: 256, 16>}, {pipeline_mode = #tpu.pipeline_mode<synchronous>, transform_indices = @transform_13, window_bounds = array<i64: 8, 16>}, {pipeline_mode = #tpu.pipeline_mode<synchronous>, transform_indices = @transform_14, window_bounds = array<i64: 16, 16>}, {pipeline_mode = #tpu.pipeline_mode<synchronous>, transform_indices = @transform_15, window_bounds = array<i64: 16, 256>}, {pipeline_mode = #tpu.pipeline_mode<synchronous>, transform_indices = @transform_16, window_bounds = array<i64: 256, 32>}, {pipeline_mode = #tpu.pipeline_mode<synchronous>, transform_indices = @transform_17, window_bounds = array<i64: 1, 32>}, {pipeline_mode = #tpu.pipeline_mode<synchronous>, transform_indices = @transform_18, window_bounds = array<i64: 32, 32>}, {pipeline_mode = #tpu.pipeline_mode<synchronous>, transform_indices = @transform_19, window_bounds = array<i64: 32, 32>}, {pipeline_mode = #tpu.pipeline_mode<synchronous>, transform_indices = @transform_20, window_bounds = array<i64: 1, 32>}, {pipeline_mode = #tpu.pipeline_mode<synchronous>, transform_indices = @transform_21, window_bounds = array<i64: 32, 32>}, {pipeline_mode = #tpu.pipeline_mode<synchronous>, transform_indices = @transform_22, window_bounds = array<i64: 1, 32>}, {transform_indices = @transform_23, window_bounds = array<i64: 8, 32>}]} {
    %c0 = arith.constant 0 : index
    %c0_0 = arith.constant 0 : index
    %0 = vector.load %arg2[%c0, %c0_0] : memref<8x32xbf16, #tpu.memory_space<vmem>>, vector<8x32xbf16>
    %c0_1 = arith.constant 0 : index
    %c0_2 = arith.constant 0 : index
    %1 = vector.load %arg3[%c0_1, %c0_2] : memref<8x8xf32, #tpu.memory_space<vmem>>, vector<8x8xf32>
    %c0_3 = arith.constant 0 : index
    %c0_4 = arith.constant 0 : index
    %2 = vector.load %arg4[%c0_3, %c0_4] : memref<8x8xf32, #tpu.memory_space<vmem>>, vector<8x8xf32>
    %cst = arith.constant dense<0x7F800000> : vector<8xf32>
    %3 = vector.multi_reduction <minimumf>, %1, %cst [1] : vector<8x8xf32> to vector<8xf32>
    %4 = vector.shape_cast %3 : vector<8xf32> to vector<8x1xf32>
    %5 = tpu.iota {dimensions = array<i32: 1>} : vector<8x8xi32>
    %c0_i32 = arith.constant 0 : i32
    %6 = vector.broadcast %c0_i32 : i32 to vector<8x8xi32>
    %7 = arith.cmpi eq, %5, %6 : vector<8x8xi32>
    %cst_5 = arith.constant 5.000000e-01 : f32
    %8 = vector.broadcast %cst_5 : f32 to vector<8x1xf32>
    %9 = arith.cmpf ogt, %4, %8 : vector<8x1xf32>
    %10 = vector.broadcast %9 : vector<8x1xi1> to vector<8x8xi1>
    %11 = arith.andi %7, %10 : vector<8x8xi1>
    %cst_6 = arith.constant 0.000000e+00 : f32
    %12 = vector.broadcast %cst_6 : f32 to vector<8x8xf32>
    %13 = arith.select %11, %12, %1 : vector<8x8xi1>, vector<8x8xf32>
    %c0_7 = arith.constant 0 : index
    %c0_8 = arith.constant 0 : index
    %14 = vector.load %arg1[%c0_7, %c0_8] : memref<8x512xbf16, #tpu.memory_space<vmem>>, vector<8x512xbf16>
    %c0_9 = arith.constant 0 : index
    %c0_10 = arith.constant 0 : index
    %15 = vector.load %arg5[%c0_9, %c0_10] : memref<512x256xbf16, #tpu.memory_space<vmem>>, vector<512x256xbf16>
    %cst_11 = arith.constant dense<0.000000e+00> : vector<8x256xf32>
    %16 = tpu.matmul %14, %15, %cst_11 {dimension_numbers = #tpu.dot_dimension_numbers<[1], [0], [0], [1], [0, 0, 1, 1], [], []>} : vector<8x512xbf16>, vector<512x256xbf16>, vector<8x256xf32> -> vector<8x256xf32>
    %17 = arith.truncf %2 : vector<8x8xf32> to vector<8x8xbf16>
    %c0_12 = arith.constant 0 : index
    %c0_13 = arith.constant 0 : index
    %18 = vector.load %arg6[%c0_12, %c0_13] : memref<8x256xbf16, #tpu.memory_space<vmem>>, vector<8x256xbf16>
    %cst_14 = arith.constant dense<0.000000e+00> : vector<8x256xf32>
    %19 = tpu.matmul %17, %18, %cst_14 {dimension_numbers = #tpu.dot_dimension_numbers<[1], [0], [0], [1], [0, 0, 1, 1], [], []>} : vector<8x8xbf16>, vector<8x256xbf16>, vector<8x256xf32> -> vector<8x256xf32>
    %20 = arith.addf %16, %19 : vector<8x256xf32>
    %21 = arith.truncf %20 : vector<8x256xf32> to vector<8x256xbf16>
    %c0_15 = arith.constant 0 : index
    %c0_16 = arith.constant 0 : index
    %22 = vector.load %arg7[%c0_15, %c0_16] : memref<32x256xbf16, #tpu.memory_space<vmem>>, vector<32x256xbf16>
    %cst_17 = arith.constant dense<0.000000e+00> : vector<8x256xf32>
    %23 = tpu.matmul %0, %22, %cst_17 {dimension_numbers = #tpu.dot_dimension_numbers<[1], [0], [0], [1], [0, 0, 1, 1], [], []>} : vector<8x32xbf16>, vector<32x256xbf16>, vector<8x256xf32> -> vector<8x256xf32>
    %c0_18 = arith.constant 0 : index
    %c0_19 = arith.constant 0 : index
    %24 = vector.load %arg8[%c0_18, %c0_19] : memref<1x256xf32, #tpu.memory_space<vmem>>, vector<1x256xf32>
    %25 = vector.broadcast %24 : vector<1x256xf32> to vector<8x256xf32>
    %26 = arith.addf %23, %25 : vector<8x256xf32>
    %c0_20 = arith.constant 0 : index
    %c0_21 = arith.constant 0 : index
    %27 = vector.load %arg9[%c0_20, %c0_21] : memref<256x256xbf16, #tpu.memory_space<vmem>>, vector<256x256xbf16>
    %cst_22 = arith.constant dense<0.000000e+00> : vector<8x256xf32>
    %28 = tpu.matmul %21, %27, %cst_22 {dimension_numbers = #tpu.dot_dimension_numbers<[1], [0], [0], [1], [0, 0, 1, 1], [], []>} : vector<8x256xbf16>, vector<256x256xbf16>, vector<8x256xf32> -> vector<8x256xf32>
    %c0_23 = arith.constant 0 : index
    %c0_24 = arith.constant 0 : index
    %29 = vector.load %arg10[%c0_23, %c0_24] : memref<1x256xf32, #tpu.memory_space<vmem>>, vector<1x256xf32>
    %30 = vector.broadcast %29 : vector<1x256xf32> to vector<8x256xf32>
    %31 = arith.addf %28, %30 : vector<8x256xf32>
    %c0_25 = arith.constant 0 : index
    %c0_26 = arith.constant 0 : index
    %32 = vector.load %arg11[%c0_25, %c0_26] : memref<256x256xbf16, #tpu.memory_space<vmem>>, vector<256x256xbf16>
    %cst_27 = arith.constant dense<0.000000e+00> : vector<8x256xf32>
    %33 = tpu.matmul %21, %32, %cst_27 {dimension_numbers = #tpu.dot_dimension_numbers<[1], [0], [0], [1], [0, 0, 1, 1], [], []>} : vector<8x256xbf16>, vector<256x256xbf16>, vector<8x256xf32> -> vector<8x256xf32>
    %c0_28 = arith.constant 0 : index
    %c0_29 = arith.constant 0 : index
    %34 = vector.load %arg12[%c0_28, %c0_29] : memref<1x256xf32, #tpu.memory_space<vmem>>, vector<1x256xf32>
    %35 = vector.broadcast %34 : vector<1x256xf32> to vector<8x256xf32>
    %36 = arith.addf %33, %35 : vector<8x256xf32>
    %37 = arith.mulf %26, %31 : vector<8x256xf32>
    %38 = arith.truncf %37 : vector<8x256xf32> to vector<8x256xbf16>
    %c0_30 = arith.constant 0 : index
    %c0_31 = arith.constant 0 : index
    %39 = vector.load %arg13[%c0_30, %c0_31] : memref<256x16xbf16, #tpu.memory_space<vmem>>, vector<256x16xbf16>
    %cst_32 = arith.constant dense<0.000000e+00> : vector<8x16xf32>
    %40 = tpu.matmul %38, %39, %cst_32 {dimension_numbers = #tpu.dot_dimension_numbers<[1], [0], [0], [1], [0, 0, 1, 1], [], []>} : vector<8x256xbf16>, vector<256x16xbf16>, vector<8x16xf32> -> vector<8x16xf32>
    %41 = arith.truncf %13 : vector<8x8xf32> to vector<8x8xbf16>
    %c0_33 = arith.constant 0 : index
    %c0_34 = arith.constant 0 : index
    %42 = vector.load %arg14[%c0_33, %c0_34] : memref<8x16xbf16, #tpu.memory_space<vmem>>, vector<8x16xbf16>
    %cst_35 = arith.constant dense<0.000000e+00> : vector<8x16xf32>
    %43 = tpu.matmul %41, %42, %cst_35 {dimension_numbers = #tpu.dot_dimension_numbers<[1], [0], [0], [1], [0, 0, 1, 1], [], []>} : vector<8x8xbf16>, vector<8x16xbf16>, vector<8x16xf32> -> vector<8x16xf32>
    %cst_36 = arith.constant -1.000000e+30 : f32
    %44 = vector.broadcast %cst_36 : f32 to vector<8x16xf32>
    %45 = arith.mulf %43, %44 : vector<8x16xf32>
    %46 = arith.addf %40, %45 : vector<8x16xf32>
    %cst_37 = arith.constant dense<0xFF800000> : vector<8xf32>
    %47 = vector.multi_reduction <maximumf>, %46, %cst_37 [1] : vector<8x16xf32> to vector<8xf32>
    %48 = vector.shape_cast %47 : vector<8xf32> to vector<8x1xf32>
    %49 = vector.broadcast %48 : vector<8x1xf32> to vector<8x16xf32>
    %50 = arith.subf %46, %49 : vector<8x16xf32>
    %51 = math.exp %50 : vector<8x16xf32>
    %52 = arith.truncf %51 : vector<8x16xf32> to vector<8x16xbf16>
    %c0_38 = arith.constant 0 : index
    %c0_39 = arith.constant 0 : index
    %53 = vector.load %arg15[%c0_38, %c0_39] : memref<16x16xbf16, #tpu.memory_space<vmem>>, vector<16x16xbf16>
    %cst_40 = arith.constant dense<0.000000e+00> : vector<8x16xf32>
    %54 = tpu.matmul %52, %53, %cst_40 {dimension_numbers = #tpu.dot_dimension_numbers<[1], [0], [0], [1], [0, 0, 1, 1], [], []>} : vector<8x16xbf16>, vector<16x16xbf16>, vector<8x16xf32> -> vector<8x16xf32>
    %55 = tpu.reciprocal %54 : vector<8x16xf32> -> vector<8x16xf32>
    %56 = arith.mulf %51, %55 : vector<8x16xf32>
    %57 = arith.truncf %56 : vector<8x16xf32> to vector<8x16xbf16>
    %c0_41 = arith.constant 0 : index
    %c0_42 = arith.constant 0 : index
    %58 = vector.load %arg16[%c0_41, %c0_42] : memref<16x256xbf16, #tpu.memory_space<vmem>>, vector<16x256xbf16>
    %cst_43 = arith.constant dense<0.000000e+00> : vector<8x256xf32>
    %59 = tpu.matmul %57, %58, %cst_43 {dimension_numbers = #tpu.dot_dimension_numbers<[1], [0], [0], [1], [0, 0, 1, 1], [], []>} : vector<8x16xbf16>, vector<16x256xbf16>, vector<8x256xf32> -> vector<8x256xf32>
    %60 = arith.mulf %59, %36 : vector<8x256xf32>
    %61 = arith.truncf %60 : vector<8x256xf32> to vector<8x256xbf16>
    %c0_44 = arith.constant 0 : index
    %c0_45 = arith.constant 0 : index
    %62 = vector.load %arg17[%c0_44, %c0_45] : memref<256x32xbf16, #tpu.memory_space<vmem>>, vector<256x32xbf16>
    %cst_46 = arith.constant dense<0.000000e+00> : vector<8x32xf32>
    %63 = tpu.matmul %61, %62, %cst_46 {dimension_numbers = #tpu.dot_dimension_numbers<[1], [0], [0], [1], [0, 0, 1, 1], [], []>} : vector<8x256xbf16>, vector<256x32xbf16>, vector<8x32xf32> -> vector<8x32xf32>
    %c0_47 = arith.constant 0 : index
    %c0_48 = arith.constant 0 : index
    %64 = vector.load %arg18[%c0_47, %c0_48] : memref<1x32xf32, #tpu.memory_space<vmem>>, vector<1x32xf32>
    %65 = vector.broadcast %64 : vector<1x32xf32> to vector<8x32xf32>
    %66 = arith.addf %63, %65 : vector<8x32xf32>
    %cst_49 = arith.constant 5.000000e-01 : f32
    %67 = vector.broadcast %cst_49 : f32 to vector<8x1xf32>
    %68 = arith.cmpf ogt, %4, %67 : vector<8x1xf32>
    %cst_50 = arith.constant 0.000000e+00 : f32
    %69 = vector.shape_cast %68 : vector<8x1xi1> to vector<8x1xi1>
    %70 = vector.broadcast %69 : vector<8x1xi1> to vector<8x32xi1>
    %71 = vector.broadcast %cst_50 : f32 to vector<8x32xf32>
    %72 = arith.select %70, %71, %66 : vector<8x32xi1>, vector<8x32xf32>
    %cst_51 = arith.constant 0.000000e+00 : f32
    %73 = vector.broadcast %cst_51 : f32 to vector<8x32xf32>
    %74 = arith.maximumf %72, %73 : vector<8x32xf32>
    %75 = arith.truncf %74 : vector<8x32xf32> to vector<8x32xbf16>
    %c0_52 = arith.constant 0 : index
    %c0_53 = arith.constant 0 : index
    %76 = vector.load %arg19[%c0_52, %c0_53] : memref<32x32xbf16, #tpu.memory_space<vmem>>, vector<32x32xbf16>
    %cst_54 = arith.constant dense<0.000000e+00> : vector<8x32xf32>
    %77 = tpu.matmul %75, %76, %cst_54 {dimension_numbers = #tpu.dot_dimension_numbers<[1], [0], [0], [1], [0, 0, 1, 1], [], []>} : vector<8x32xbf16>, vector<32x32xbf16>, vector<8x32xf32> -> vector<8x32xf32>
    %c0_55 = arith.constant 0 : index
    %c0_56 = arith.constant 0 : index
    %78 = vector.load %arg20[%c0_55, %c0_56] : memref<32x32xbf16, #tpu.memory_space<vmem>>, vector<32x32xbf16>
    %cst_57 = arith.constant dense<0.000000e+00> : vector<8x32xf32>
    %79 = tpu.matmul %0, %78, %cst_57 {dimension_numbers = #tpu.dot_dimension_numbers<[1], [0], [0], [1], [0, 0, 1, 1], [], []>} : vector<8x32xbf16>, vector<32x32xbf16>, vector<8x32xf32> -> vector<8x32xf32>
    %80 = arith.addf %77, %79 : vector<8x32xf32>
    %c0_58 = arith.constant 0 : index
    %c0_59 = arith.constant 0 : index
    %81 = vector.load %arg21[%c0_58, %c0_59] : memref<1x32xf32, #tpu.memory_space<vmem>>, vector<1x32xf32>
    %82 = vector.broadcast %81 : vector<1x32xf32> to vector<8x32xf32>
    %83 = arith.addf %80, %82 : vector<8x32xf32>
    %cst_60 = arith.constant 0.000000e+00 : f32
    %84 = vector.broadcast %cst_60 : f32 to vector<8x32xf32>
    %85 = arith.maximumf %83, %84 : vector<8x32xf32>
    %86 = arith.truncf %85 : vector<8x32xf32> to vector<8x32xbf16>
    %c0_61 = arith.constant 0 : index
    %c0_62 = arith.constant 0 : index
    %87 = vector.load %arg22[%c0_61, %c0_62] : memref<32x32xbf16, #tpu.memory_space<vmem>>, vector<32x32xbf16>
    %cst_63 = arith.constant dense<0.000000e+00> : vector<8x32xf32>
    %88 = tpu.matmul %86, %87, %cst_63 {dimension_numbers = #tpu.dot_dimension_numbers<[1], [0], [0], [1], [0, 0, 1, 1], [], []>} : vector<8x32xbf16>, vector<32x32xbf16>, vector<8x32xf32> -> vector<8x32xf32>
    %c0_64 = arith.constant 0 : index
    %c0_65 = arith.constant 0 : index
    %89 = vector.load %arg23[%c0_64, %c0_65] : memref<1x32xf32, #tpu.memory_space<vmem>>, vector<1x32xf32>
    %90 = vector.broadcast %89 : vector<1x32xf32> to vector<8x32xf32>
    %91 = arith.addf %88, %90 : vector<8x32xf32>
    %c0_66 = arith.constant 0 : index
    %c0_67 = arith.constant 0 : index
    %92 = vector.load %arg24[%c0_66, %c0_67] : memref<8x32xf32, #tpu.memory_space<vmem>>, vector<8x32xf32>
    tpu.vector_store %arg24[%c0_66, %c0_67], %91 {strides = array<i32>} : memref<8x32xf32, #tpu.memory_space<vmem>>, vector<8x32xf32>,
    return
  }
  func.func @transform_0(%arg0: i32) -> (i32, i32) {
    %c0_i32 = arith.constant 0 : i32
    %c0_i32_0 = arith.constant 0 : i32
    return %arg0, %c0_i32 : i32, i32
  }
  func.func @transform_1(%arg0: i32) -> (i32, i32) {
    %c0_i32 = arith.constant 0 : i32
    %c0_i32_0 = arith.constant 0 : i32
    return %arg0, %c0_i32 : i32, i32
  }
  func.func @transform_2(%arg0: i32) -> (i32, i32) {
    %c0_i32 = arith.constant 0 : i32
    %c0_i32_0 = arith.constant 0 : i32
    return %arg0, %c0_i32 : i32, i32
  }
  func.func @transform_3(%arg0: i32) -> (i32, i32) {
    %c0_i32 = arith.constant 0 : i32
    %c0_i32_0 = arith.constant 0 : i32
    return %arg0, %c0_i32 : i32, i32
  }
  func.func @transform_4(%arg0: i32) -> (i32, i32) {
    %c0_i32 = arith.constant 0 : i32
    %c0_i32_0 = arith.constant 0 : i32
    %c0_i32_1 = arith.constant 0 : i32
    return %c0_i32, %c0_i32_0 : i32, i32
  }
  func.func @transform_5(%arg0: i32) -> (i32, i32) {
    %c0_i32 = arith.constant 0 : i32
    %c0_i32_0 = arith.constant 0 : i32
    %c0_i32_1 = arith.constant 0 : i32
    return %c0_i32, %c0_i32_0 : i32, i32
  }
  func.func @transform_6(%arg0: i32) -> (i32, i32) {
    %c0_i32 = arith.constant 0 : i32
    %c0_i32_0 = arith.constant 0 : i32
    %c0_i32_1 = arith.constant 0 : i32
    return %c0_i32, %c0_i32_0 : i32, i32
  }
  func.func @transform_7(%arg0: i32) -> (i32, i32) {
    %c0_i32 = arith.constant 0 : i32
    %c0_i32_0 = arith.constant 0 : i32
    %c0_i32_1 = arith.constant 0 : i32
    return %c0_i32, %c0_i32_0 : i32, i32
  }
  func.func @transform_8(%arg0: i32) -> (i32, i32) {
    %c0_i32 = arith.constant 0 : i32
    %c0_i32_0 = arith.constant 0 : i32
    %c0_i32_1 = arith.constant 0 : i32
    return %c0_i32, %c0_i32_0 : i32, i32
  }
  func.func @transform_9(%arg0: i32) -> (i32, i32) {
    %c0_i32 = arith.constant 0 : i32
    %c0_i32_0 = arith.constant 0 : i32
    %c0_i32_1 = arith.constant 0 : i32
    return %c0_i32, %c0_i32_0 : i32, i32
  }
  func.func @transform_10(%arg0: i32) -> (i32, i32) {
    %c0_i32 = arith.constant 0 : i32
    %c0_i32_0 = arith.constant 0 : i32
    %c0_i32_1 = arith.constant 0 : i32
    return %c0_i32, %c0_i32_0 : i32, i32
  }
  func.func @transform_11(%arg0: i32) -> (i32, i32) {
    %c0_i32 = arith.constant 0 : i32
    %c0_i32_0 = arith.constant 0 : i32
    %c0_i32_1 = arith.constant 0 : i32
    return %c0_i32, %c0_i32_0 : i32, i32
  }
  func.func @transform_12(%arg0: i32) -> (i32, i32) {
    %c0_i32 = arith.constant 0 : i32
    %c0_i32_0 = arith.constant 0 : i32
    %c0_i32_1 = arith.constant 0 : i32
    return %c0_i32, %c0_i32_0 : i32, i32
  }
  func.func @transform_13(%arg0: i32) -> (i32, i32) {
    %c0_i32 = arith.constant 0 : i32
    %c0_i32_0 = arith.constant 0 : i32
    %c0_i32_1 = arith.constant 0 : i32
    return %c0_i32, %c0_i32_0 : i32, i32
  }
  func.func @transform_14(%arg0: i32) -> (i32, i32) {
    %c0_i32 = arith.constant 0 : i32
    %c0_i32_0 = arith.constant 0 : i32
    %c0_i32_1 = arith.constant 0 : i32
    return %c0_i32, %c0_i32_0 : i32, i32
  }
  func.func @transform_15(%arg0: i32) -> (i32, i32) {
    %c0_i32 = arith.constant 0 : i32
    %c0_i32_0 = arith.constant 0 : i32
    %c0_i32_1 = arith.constant 0 : i32
    return %c0_i32, %c0_i32_0 : i32, i32
  }
  func.func @transform_16(%arg0: i32) -> (i32, i32) {
    %c0_i32 = arith.constant 0 : i32
    %c0_i32_0 = arith.constant 0 : i32
    %c0_i32_1 = arith.constant 0 : i32
    return %c0_i32, %c0_i32_0 : i32, i32
  }
  func.func @transform_17(%arg0: i32) -> (i32, i32) {
    %c0_i32 = arith.constant 0 : i32
    %c0_i32_0 = arith.constant 0 : i32
    %c0_i32_1 = arith.constant 0 : i32
    return %c0_i32, %c0_i32_0 : i32, i32
  }
  func.func @transform_18(%arg0: i32) -> (i32, i32) {
    %c0_i32 = arith.constant 0 : i32
    %c0_i32_0 = arith.constant 0 : i32
    %c0_i32_1 = arith.constant 0 : i32
    return %c0_i32, %c0_i32_0 : i32, i32
  }
  func.func @transform_19(%arg0: i32) -> (i32, i32) {
    %c0_i32 = arith.constant 0 : i32
    %c0_i32_0 = arith.constant 0 : i32
    %c0_i32_1 = arith.constant 0 : i32
    return %c0_i32, %c0_i32_0 : i32, i32
  }
  func.func @transform_20(%arg0: i32) -> (i32, i32) {
    %c0_i32 = arith.constant 0 : i32
    %c0_i32_0 = arith.constant 0 : i32
    %c0_i32_1 = arith.constant 0 : i32
    return %c0_i32, %c0_i32_0 : i32, i32
  }
  func.func @transform_21(%arg0: i32) -> (i32, i32) {
    %c0_i32 = arith.constant 0 : i32
    %c0_i32_0 = arith.constant 0 : i32
    %c0_i32_1 = arith.constant 0 : i32
    return %c0_i32, %c0_i32_0 : i32, i32
  }
  func.func @transform_22(%arg0: i32) -> (i32, i32) {
    %c0_i32 = arith.constant 0 : i32
    %c0_i32_0 = arith.constant 0 : i32
    %c0_i32_1 = arith.constant 0 : i32
    return %c0_i32, %c0_i32_0 : i32, i32
  }
  func.func @transform_23(%arg0: i32) -> (i32, i32) {
    %c0_i32 = arith.constant 0 : i32
    %c0_i32_0 = arith.constant 0 : i32
    return %arg0, %c0_i32 : i32, i32
  }
}

</mosaic_0001>

<bundles_post_ra>
// kernel: gat_layer_forward.1
= control target key start
LH: loop header
LB: loop body
LE: loop exit
PB: predicated region body
PF: predicated region fallthrough
CT: control target
= control target key end

     0   :  { %s4769_s0 = inlined_call_operand.vmem [shape: bf16[16,512], index: 0, kind: input, shape index: {}]   ;;  %s4770_s1 = inlined_call_operand.vmem [shape: bf16[16,32], index: 1, kind: input, shape index: {}]   ;;  %s4771_s2 = inlined_call_operand.vmem [shape: f32[16,8], index: 2, kind: input, shape index: {}]   ;;  %s4772_s3 = inlined_call_operand.vmem [shape: f32[16,8], index: 3, kind: input, shape index: {}]   ;;  %s4773_s4 = inlined_call_operand.vmem [shape: bf16[512,256], index: 4, kind: input, shape index: {}]   ;;  %s4774_s5 = inlined_call_operand.vmem [shape: bf16[8,256], index: 5, kind: input, shape index: {}]   ;;  %s4775_s6 = inlined_call_operand.vmem [shape: bf16[32,256], index: 6, kind: input, shape index: {}]   ;;  %s4776_s7 = inlined_call_operand.vmem [shape: f32[1,256], index: 7, kind: input, shape index: {}]   ;;  %s4777_s8 = inlined_call_operand.vmem [shape: bf16[256,256], index: 8, kind: input, shape index: {}]   ;;  %s4778_s9 = inlined_call_operand.vmem [shape: f32[1,256], index: 9, kind: input, shape index: {}]   ;;  %s4779_s10 = inlined_call_operand.vmem [shape: bf16[256,256], index: 10, kind: input, shape index: {}]   ;;  %s4780_s11 = inlined_call_operand.vmem [shape: f32[1,256], index: 11, kind: input, shape index: {}]   ;;  %s4781_s12 = inlined_call_operand.vmem [shape: bf16[256,16], index: 12, kind: input, shape index: {}]   ;;  %s4782_s13 = inlined_call_operand.vmem [shape: bf16[8,16], index: 13, kind: input, shape index: {}]   ;;  %s4783_s14 = inlined_call_operand.vmem [shape: bf16[16,16], index: 14, kind: input, shape index: {}]   ;;  %s4784_s15 = inlined_call_operand.vmem [shape: bf16[16,256], index: 15, kind: input, shape index: {}]   ;;  %s4785_s16 = inlined_call_operand.vmem [shape: bf16[256,32], index: 16, kind: input, shape index: {}]   ;;  %s4786_s17 = inlined_call_operand.vmem [shape: f32[1,32], index: 17, kind: input, shape index: {}]   ;;  %s4787_s18 = inlined_call_operand.vmem [shape: bf16[32,32], index: 18, kind: input, shape index: {}]   ;;  %s4788_s19 = inlined_call_operand.vmem [shape: bf16[32,32], index: 19, kind: input, shape index: {}]   ;;  %s4789_s20 = inlined_call_operand.vmem [shape: f32[1,32], index: 20, kind: input, shape index: {}]   ;;  %s4790_s21 = inlined_call_operand.vmem [shape: bf16[32,32], index: 21, kind: input, shape index: {}]   ;;  %s4791_s22 = inlined_call_operand.vmem [shape: f32[1,32], index: 22, kind: input, shape index: {}]   ;;  %s4792_s23 = inlined_call_operand.hbm [shape: f32[16,32], index: 23, kind: output, shape index: {}]  }
   0x1   :  { %4807 = sst [smem:[#allocation13_spill]] %s4769_s0 }
   0x2   :  { %4808 = sst [smem:[#allocation14_spill]] %s4770_s1 }
   0x3   :  { %4809 = sst [smem:[#allocation15_spill]] %s4771_s2 }
   0x4   :  { %4810 = sst [smem:[#allocation16_spill]] %s4772_s3 }
   0x5   :  { %4811 = sst [smem:[#allocation17_spill]] %s4773_s4 }
   0x6   :  { %4812 = sst [smem:[#allocation18_spill]] %s4774_s5 }
   0x7   :  { %4813 = sst [smem:[#allocation19_spill]] %s4775_s6 }
   0x8   :  { %4814 = sst [smem:[#allocation20_spill]] %s4776_s7 }
   0x9   :  { %4815 = sst [smem:[#allocation21_spill]] %s4777_s8 }
   0xa   :  { %4816 = sst [smem:[#allocation22_spill]] %s4778_s9 }
   0xb   :  { %4817 = sst [smem:[#allocation23_spill]] %s4789_s20 }
   0xc   :  { %4818 = sst [smem:[#allocation24_spill]] %s4791_s22 }
   0xd   :  { %4819 = sst [smem:[#allocation25_spill]] %s4792_s23 }
   0xe   :  { %28 = vsyncpa [#allocation3], 0 }
   0xf   :  { %30 = vsyncpa [#allocation3 + $0x1], 0  ;;  %s3656_s4 = smov 0   ;;  %s3658_s30 = smov 0  }
  0x10   :  { %s3660_s24 = smov 0   ;;  %s3662_s25 = smov 0  }
  0x11 LB: > { %4820 = sst [smem:[#allocation5_spill]] %s3522_s4  ;;  %s3677_s5 = sadd.s32 4294967295, %s3534_s25   ;;  %s3534_s25 = sphi %s3662_s25, %s4851_s25   ;;  %s3530_s24 = sphi %s3660_s24, %s4853_s24   ;;  %s3526_s30 = sphi %s3658_s30, %s4855_s30   ;;  %s3522_s4 = sphi %s3656_s4, %s4854_s4  }
  0x12   : > { %4821 = sst [smem:[#allocation6_spill]] %s3530_s24  ;;  %s2535_s1 = sadd.s32 4294967294, %s3534_s25  }
  0x13   : > { %4822 = sst [smem:[#allocation7_spill]] %s3534_s25  ;;  %s3681_s26 = sadd.s32 1, %s3534_s25  }
  0x14   : > { %4823 = sst [smem:[#allocation8_spill]] %s3677_s5  ;;  %s546_s2 = sadd.s32 1, %s3530_s24 }
  0x15   : > { %4824 = sst [smem:[#allocation9_spill]] %s3681_s26  ;;  %s543_s6 = ssub.s32 %s3534_s25, %s3681_s26 }
  0x16   : > { %p556_p0 = scmp.ne.s32.totalorder %s3530_s24, %s3526_s30  ;;  %p544_p1 = scmp.eq.s32.totalorder %s543_s6, 0 }
  0x17   : > { %p557_p2 = scmp.eq.s32.totalorder %s3677_s5, 1  ;;  %p562_p3 = scmp.ne.s32.totalorder %s3526_s30, %s3522_s4 }
  0x18   : > { %p563_p4 = scmp.eq.s32.totalorder %s2535_s1, 1  ;;  %p2538_p7 = scmp.ge.s32.totalorder %s3534_s25, 1 }
  0x19   : > { %s3692_s27 = scalar_select %p544_p1, %s3530_s24, %s546_s2  }
  0x1a   : > { %p3694_p5 = por %p557_p2, %p556_p0  ;;  %p3698_p6 = por %p563_p4, %p562_p3 }
  0x1b   : > { %4825 = sst [smem:[#allocation10_spill]] %s3692_s27  ;;  %p667_p8 = scmp.lt.s32.totalorder %s3534_s25, 3 }
  0x1c   : > { %s4826_s7 = scalar_select %p3694_p5, 1, 0 }
  0x1d   : > { %s4828_s28 = scalar_select %p3698_p6, 1, 0 }
  0x1e   : > { %4827 = sst [smem:[#allocation11_spill]] %s4826_s7  ;;  %p668_p9 = pnand %p2538_p7, %p667_p8 }
  0x1f   : > { %4829 = sst [smem:[#allocation12_spill]] %s4828_s28  ;;  %p743_p10 = scmp.lt.s32.totalorder (!%p668_p9), %s3677_s5, 1 }
  0x20   : > { %671 = sbr.rel (%p668_p9) target bundleno = 1353 (0x549), region = 112  ;;  %s4830_s0 = sld [smem:[#allocation17_spill]] (!%p668_p9) }
  0x21   : > { %s4831_s25 = sld [smem:[#allocation18_spill]] (!%p668_p9) }
  0x22   : > { %s4832_s23 = sld [smem:[#allocation16_spill]] (!%p668_p9) }
  0x23   : > { %s4834_s24 = sld [smem:[#allocation19_spill]] (!%p668_p9) }
  0x24   : > { %s4836_s8 = sld [smem:[#allocation21_spill]] (!%p668_p9) }
  0x25   : > { %vm852_vm0 = vcmask 1043456   ;;  %s3852_s2 = scalar_select %p743_p10, %s3677_s5, 1  ;;  %vm764_vm1 = vcmask 64512   ;;  %vm1355_vm2 = vcmask 261120   ;;  %vm2065_vm6 = vcmask 130048  }
  0x26   : > { %v2605_v0 = vld [vmem:[%s4830_s0 + $0x70] sm:$0xf]  ;;  %v3268_v1 = vld [vmem:[%s4830_s0 + $0x74] sm:$0xf0]  ;;  %v2597_v6 = vld [vmem:[%s4830_s0 + $0x60] sm:$0xf] }
  0x27   : > { %v2669_v2 = vld [vmem:[%s4830_s0 + $0xf0] sm:$0xf]  ;;  %v2606_v3 = vor.u32 %v3268_v1, %v2605_v0  ;;  %v3284_v4 = vld [vmem:[%s4830_s0 + $0xf4] sm:$0xf0]  ;;  %v843_v5 = vld [vmem:[%s4831_s25] sm:$0xff]  ;;  %s4805_s1 = sshll.u32 %s3852_s2, 3 }
  0x28   : > { %v2670_v7 = vor.u32 %v3284_v4, %v2669_v2  ;;  %v845_v8 = vunpack.c.l.b16 %v843_v5  ;;  %v846_v9 = vunpack.c.h.b16 %v843_v5  ;;  %v3266_v10 = vld [vmem:[%s4830_s0 + $0x64] sm:$0xf0]  ;;  %v2661_v11 = vld [vmem:[%s4830_s0 + $0xe0] sm:$0xf]  ;;  %v2733_v13 = vld [vmem:[%s4830_s0 + $0x170] sm:$0xf]  ;;  %s759_s4 = scalar_lea.vmem %s4832_s23, %s4805_s1 }
  0x29   : > { %v3282_v12 = vld [vmem:[%s4830_s0 + $0xe4] sm:$0xf0]  ;;  %1219 = vmatpush.bf16.msra.mxu2 %v2606_v3  ;;  %v3300_v14 = vld [vmem:[%s4830_s0 + $0x174] sm:$0xf0]  ;;  %v2797_v15 = vld [vmem:[%s4830_s0 + $0x1f0] sm:$0xf]  ;;  %v2598_v18 = vor.u32 %v3266_v10, %v2597_v6  ;;  %s4835_s26 = smov %s4834_s24 }
  0x2a   : > { %1232 = vmatpush.bf16.msra.mxu3 %v2670_v7  ;;  %v847_v16 = vpack.c.b16 %v845_v8, %v845_v8  ;;  %v848_v17 = vpack.c.b16 %v846_v9, %v846_v9  ;;  %v2662_v19 = vor.u32 %v3282_v12, %v2661_v11  ;;  %v3316_v20 = vld [vmem:[%s4830_s0 + $0x1f4] sm:$0xf0]  ;;  %v2589_v21 = vld [vmem:[%s4830_s0 + $0x50] sm:$0xf]  ;;  %v2734_v23 = vor.u32 %v3300_v14, %v2733_v13  ;;  %v2725_v27 = vld [vmem:[%s4830_s0 + $0x160] sm:$0xf] }
  0x2b   : > { %v3264_v22 = vld [vmem:[%s4830_s0 + $0x54] sm:$0xf0]  ;;  %v2798_v24 = vor.u32 %v3316_v20, %v2797_v15  ;;  %v2653_v25 = vld [vmem:[%s4830_s0 + $0xd0] sm:$0xf]  ;;  %v3298_v30 = vld [vmem:[%s4830_s0 + $0x164] sm:$0xf0] }
  0x2c   : > { %v3280_v26 = vld [vmem:[%s4830_s0 + $0xd4] sm:$0xf0]  ;;  %v854_v28 = vsel %vm852_vm0, %v847_v16, 0  ;;  %v857_v29 = vsel %vm852_vm0, %v848_v17, 0  ;;  %v2789_v31 = vld [vmem:[%s4830_s0 + $0x1e0] sm:$0xf]  ;;  %v2590_v33 = vor.u32 %v3264_v22, %v2589_v21  ;;  %v2726_v37 = vor.u32 %v3298_v30, %v2725_v27 }
  0x2d   : > { %866 = vmatpush.bf16.msra.mxu0 %v854_v28  ;;  %879 = vmatpush.bf16.msra.mxu1 %v857_v29  ;;  %v3314_v32 = vld [vmem:[%s4830_s0 + $0x1e4] sm:$0xf0]  ;;  %v2654_v34 = vor.u32 %v3280_v26, %v2653_v25  ;;  %v2581_v35 = vld [vmem:[%s4830_s0 + $0x40] sm:$0xf]  ;;  %v2717_v41 = vld [vmem:[%s4830_s0 + $0x150] sm:$0xf] }
  0x2e   : > { %1220 = vmatpush.bf16.msra.mxu2 %v2598_v18  ;;  %1233 = vmatpush.bf16.msra.mxu3 %v2662_v19  ;;  %v3262_v36 = vld [vmem:[%s4830_s0 + $0x44] sm:$0xf0]  ;;  %v2790_v38 = vor.u32 %v3314_v32, %v2789_v31  ;;  %v2645_v39 = vld [vmem:[%s4830_s0 + $0xc0] sm:$0xf]  ;;  %v3296_v42 = vld [vmem:[%s4830_s0 + $0x154] sm:$0xf0] }
  0x2f   : > { %v3278_v40 = vld [vmem:[%s4830_s0 + $0xc4] sm:$0xf0]  ;;  %v2781_v43 = vld [vmem:[%s4830_s0 + $0x1d0] sm:$0xf]  ;;  %v3312_v44 = vld [vmem:[%s4830_s0 + $0x1d4] sm:$0xf0]  ;;  %v2582_v45 = vor.u32 %v3262_v36, %v2581_v35  ;;  %v2718_v49 = vor.u32 %v3296_v42, %v2717_v41 }
  0x30   : > { %v2646_v46 = vor.u32 %v3278_v40, %v2645_v39  ;;  %v2573_v47 = vld [vmem:[%s4830_s0 + $0x30] sm:$0xf]  ;;  %v3260_v48 = vld [vmem:[%s4830_s0 + $0x34] sm:$0xf0]  ;;  %v2782_v50 = vor.u32 %v3312_v44, %v2781_v43  ;;  %v2709_v53 = vld [vmem:[%s4830_s0 + $0x140] sm:$0xf] }
  0x31   : > { %1245 = vmatpush.bf16.msrb.mxu0 %v2734_v23  ;;  %1258 = vmatpush.bf16.msrb.mxu1 %v2798_v24  ;;  %v2637_v51 = vld [vmem:[%s4830_s0 + $0xb0] sm:$0xf]  ;;  %v3276_v52 = vld [vmem:[%s4830_s0 + $0xb4] sm:$0xf0]  ;;  %v3294_v54 = vld [vmem:[%s4830_s0 + $0x144] sm:$0xf0]  ;;  %v2574_v57 = vor.u32 %v3260_v48, %v2573_v47 }
  0x32   : > { %1221 = vmatpush.bf16.msra.mxu2 %v2590_v33  ;;  %1234 = vmatpush.bf16.msra.mxu3 %v2654_v34  ;;  %v2773_v55 = vld [vmem:[%s4830_s0 + $0x1c0] sm:$0xf]  ;;  %v3310_v56 = vld [vmem:[%s4830_s0 + $0x1c4] sm:$0xf0]  ;;  %v2638_v58 = vor.u32 %v3276_v52, %v2637_v51  ;;  %v2710_v62 = vor.u32 %v3294_v54, %v2709_v53  ;;  %v2701_v1 = vld [vmem:[%s4830_s0 + $0x130] sm:$0xf] }
  0x33   : > { %v2565_v59 = vld [vmem:[%s4830_s0 + $0x20] sm:$0xf]  ;;  %v3258_v60 = vld [vmem:[%s4830_s0 + $0x24] sm:$0xf0]  ;;  %v2774_v63 = vor.u32 %v3310_v56, %v2773_v55  ;;  %v3292_v2 = vld [vmem:[%s4830_s0 + $0x134] sm:$0xf0] }
  0x34   : > { %v2629_v61 = vld [vmem:[%s4830_s0 + $0xa0] sm:$0xf]  ;;  %v3274_v0 = vld [vmem:[%s4830_s0 + $0xa4] sm:$0xf0]  ;;  %v2765_v3 = vld [vmem:[%s4830_s0 + $0x1b0] sm:$0xf]  ;;  %v2566_v6 = vor.u32 %v3258_v60, %v2565_v59  ;;  %v2702_v10 = vor.u32 %v3292_v2, %v2701_v1 }
  0x35   : > { %1246 = vmatpush.bf16.msrb.mxu0 %v2726_v37  ;;  %1259 = vmatpush.bf16.msrb.mxu1 %v2790_v38  ;;  %v3308_v4 = vld [vmem:[%s4830_s0 + $0x1b4] sm:$0xf0]  ;;  %v2557_v5 = vld [vmem:[%s4830_s0 + $0x10] sm:$0xf]  ;;  %v2630_v7 = vor.u32 %v3274_v0, %v2629_v61  ;;  %v2693_v13 = vld [vmem:[%s4830_s0 + $0x120] sm:$0xf] }
  0x36   : > { %1222 = vmatpush.bf16.msra.mxu2 %v2582_v45  ;;  %1235 = vmatpush.bf16.msra.mxu3 %v2646_v46  ;;  %v3256_v8 = vld [vmem:[%s4830_s0 + $0x14] sm:$0xf0]  ;;  %v2621_v9 = vld [vmem:[%s4830_s0 + $0x90] sm:$0xf]  ;;  %v2766_v11 = vor.u32 %v3308_v4, %v2765_v3  ;;  %v3290_v14 = vld [vmem:[%s4830_s0 + $0x124] sm:$0xf0] }
  0x37   : > { %v3272_v12 = vld [vmem:[%s4830_s0 + $0x94] sm:$0xf0]  ;;  %v2757_v15 = vld [vmem:[%s4830_s0 + $0x1a0] sm:$0xf]  ;;  %v3306_v16 = vld [vmem:[%s4830_s0 + $0x1a4] sm:$0xf0]  ;;  %v2558_v19 = vor.u32 %v3256_v8, %v2557_v5  ;;  %v2694_v24 = vor.u32 %v3290_v14, %v2693_v13 }
  0x38   : > { %s3252_s7 = sshll.u32 %s3852_s2, 4  ;;  %v2549_v17 = vld [vmem:[%s4830_s0] sm:$0xf]  ;;  %v3254_v18 = vld [vmem:[%s4830_s0 + $0x4] sm:$0xf0]  ;;  %s4833_s5 = sld [smem:[#allocation13_spill]]  ;;  %v2622_v20 = vor.u32 %v3272_v12, %v2621_v9  ;;  %v2758_v25 = vor.u32 %v3306_v16, %v2757_v15 }
  0x39   : > { %1247 = vmatpush.bf16.msrb.mxu0 %v2718_v49  ;;  %1260 = vmatpush.bf16.msrb.mxu1 %v2782_v50  ;;  %v763_v21 = vld [vmem:[%s759_s4] sm:$0xff]  ;;  %v3270_v27 = vld [vmem:[%s4830_s0 + $0x84] sm:$0xf0]  ;;  %v2685_v28 = vld [vmem:[%s4830_s0 + $0x110] sm:$0xf]  ;;  %v2550_v38 = vor.u32 %v3254_v18, %v2549_v17  ;;  %s4837_s4 = sld [smem:[#allocation14_spill]] }
  0x3a   : > { %1223 = vmatpush.bf16.msra.mxu2 %v2574_v57  ;;  %1236 = vmatpush.bf16.msra.mxu3 %v2638_v58  ;;  %v2613_v22 = vld [vmem:[%s4830_s0 + $0x80] sm:$0xf]  ;;  %v842_v26 = vpack.c.bf16 %v763_v21, %v763_v21  ;;  %v3288_v29 = vld [vmem:[%s4830_s0 + $0x114] sm:$0xf0]  ;;  %v2749_v30 = vld [vmem:[%s4830_s0 + $0x190] sm:$0xf] }
  0x3b   : > { %v3304_v31 = vld [vmem:[%s4830_s0 + $0x194] sm:$0xf0]  ;;  %v3267_v32 = vld [vmem:[%s4830_s0 + $0x74] sm:$0xf]  ;;  %v2607_v33 = vld [vmem:[%s4830_s0 + $0x78] sm:$0xf0]  ;;  %v2614_v39 = vor.u32 %v3270_v27, %v2613_v22  ;;  %v2686_v40 = vor.u32 %v3288_v29, %v2685_v28 }
  0x3c   : > { %2545 = vmatmul.msk.bf16.vlgmr.msra.gmra.mxu0 %vm764_vm1, %v842_v26  ;;  %2546 = vmatmul.msk.bf16.vlgmr.msra.gmra.mxu1 %vm764_vm1, %v842_v26  ;;  %v3283_v34 = vld [vmem:[%s4830_s0 + $0xf4] sm:$0xf]  ;;  %v2671_v35 = vld [vmem:[%s4830_s0 + $0xf8] sm:$0xf0]  ;;  %v2750_v41 = vor.u32 %v3304_v31, %v2749_v30  ;;  %v2677_v42 = vld [vmem:[%s4830_s0 + $0x100] sm:$0xf]  ;;  %v2610_v45 = vor.u32 %v3267_v32, %v2607_v33 }
  0x3d   : > { %1248 = vmatpush.bf16.msrb.mxu0 %v2710_v62  ;;  %1261 = vmatpush.bf16.msrb.mxu1 %v2774_v63  ;;  %v3286_v43 = vld [vmem:[%s4830_s0 + $0x104] sm:$0xf0]  ;;  %v2741_v44 = vld [vmem:[%s4830_s0 + $0x180] sm:$0xf]  ;;  %v2674_v46 = vor.u32 %v3283_v34, %v2671_v35  ;;  %v3265_v48 = vld [vmem:[%s4830_s0 + $0x64] sm:$0xf] }
  0x3e   : > { %s3885_s6 = scalar_lea.vmem %s4833_s5, %s3252_s7  ;;  %1224 = vmatpush.bf16.msra.mxu2 %v2566_v6  ;;  %1237 = vmatpush.bf16.msra.mxu3 %v2630_v7  ;;  %v3302_v47 = vld [vmem:[%s4830_s0 + $0x184] sm:$0xf0]  ;;  %v2599_v49 = vld [vmem:[%s4830_s0 + $0x68] sm:$0xf0]  ;;  %v3281_v52 = vld [vmem:[%s4830_s0 + $0xe4] sm:$0xf]  ;;  %v2678_v59 = vor.u32 %v3286_v43, %v2677_v42 }
  0x3f   : > { %v776_v23 = vld [vmem:[%s3885_s6] sm:$0xff]  ;;  %v2663_v53 = vld [vmem:[%s4830_s0 + $0xe8] sm:$0xf0]  ;;  %v3299_v54 = vld [vmem:[%s4830_s0 + $0x174] sm:$0xf]  ;;  %v2742_v60 = vor.u32 %v3302_v47, %v2741_v44  ;;  %v2602_v61 = vor.u32 %v3265_v48, %v2599_v49  ;;  %s2542_s5 = sshll.u32 %s3852_s2, 2 }
  0x40   : > { %v887_v36 = vunpack.c.l.b16 %v776_v23  ;;  %v888_v37 = vunpack.c.h.b16 %v776_v23  ;;  %v2735_v55 = vld [vmem:[%s4830_s0 + $0x178] sm:$0xf0]  ;;  %v3315_v56 = vld [vmem:[%s4830_s0 + $0x1f4] sm:$0xf]  ;;  %v777_v58 = vld [vmem:[%s3885_s6 + $0x8] sm:$0xff]  ;;  %v2666_v62 = vor.u32 %v3281_v52, %v2663_v53  ;;  %s751_s22 = scalar_lea.vmem %s4837_s4, %s2542_s5  ;;  %s4838_s28 = sshll.u32 %s3852_s2, 3 }
  0x41   : > { %1249 = vmatpush.bf16.msrb.mxu0 %v2702_v10  ;;  %1262 = vmatpush.bf16.msrb.mxu1 %v2766_v11  ;;  %v2799_v57 = vld [vmem:[%s4830_s0 + $0x1f8] sm:$0xf0]  ;;  %v3263_v63 = vld [vmem:[%s4830_s0 + $0x54] sm:$0xf]  ;;  %v2738_v1 = vor.u32 %v3299_v54, %v2735_v55  ;;  %v3297_v5 = vld [vmem:[%s4830_s0 + $0x164] sm:$0xf]  ;;  %v889_v9 = vunpack.c.l.b16 %v777_v58  ;;  %v890_v10 = vunpack.c.h.b16 %v777_v58 }
  0x42   : > { %1225 = vmatpush.bf16.msra.mxu2 %v2558_v19  ;;  %1238 = vmatpush.bf16.msra.mxu3 %v2622_v20  ;;  %v3938_v50 = vpack.c.b16 %v887_v36, %v887_v36  ;;  %v3940_v51 = vpack.c.b16 %v888_v37, %v888_v37  ;;  %v2591_v0 = vld [vmem:[%s4830_s0 + $0x58] sm:$0xf0]  ;;  %v2802_v2 = vor.u32 %v3315_v56, %v2799_v57  ;;  %v3279_v3 = vld [vmem:[%s4830_s0 + $0xd4] sm:$0xf]  ;;  %v2727_v6 = vld [vmem:[%s4830_s0 + $0x168] sm:$0xf0] }
  0x43   : > { %v2655_v4 = vld [vmem:[%s4830_s0 + $0xd8] sm:$0xf0]  ;;  %v3313_v7 = vld [vmem:[%s4830_s0 + $0x1e4] sm:$0xf]  ;;  %v2791_v8 = vld [vmem:[%s4830_s0 + $0x1e8] sm:$0xf0]  ;;  %v2594_v11 = vor.u32 %v3263_v63, %v2591_v0  ;;  %v2730_v15 = vor.u32 %v3297_v5, %v2727_v6  ;;  %v4002_v20 = vpack.c.b16 %v889_v9, %v889_v9 }
  0x44   : > { %v2658_v12 = vor.u32 %v3279_v3, %v2655_v4  ;;  %v3261_v13 = vld [vmem:[%s4830_s0 + $0x44] sm:$0xf]  ;;  %v2583_v14 = vld [vmem:[%s4830_s0 + $0x48] sm:$0xf0]  ;;  %v2794_v16 = vor.u32 %v3313_v7, %v2791_v8  ;;  %v3295_v19 = vld [vmem:[%s4830_s0 + $0x154] sm:$0xf] }
  0x45   : > { %1250 = vmatpush.bf16.msrb.mxu0 %v2694_v24  ;;  %1263 = vmatpush.bf16.msrb.mxu1 %v2758_v25  ;;  %v3277_v17 = vld [vmem:[%s4830_s0 + $0xc4] sm:$0xf]  ;;  %v2647_v18 = vld [vmem:[%s4830_s0 + $0xc8] sm:$0xf0]  ;;  %v2719_v21 = vld [vmem:[%s4830_s0 + $0x158] sm:$0xf0]  ;;  %v4013_v24 = vpack.c.b16 %v890_v10, %v890_v10  ;;  %v2586_v25 = vor.u32 %v3261_v13, %v2583_v14 }
  0x46   : > { %1226 = vmatpush.bf16.msra.mxu2 %v2550_v38  ;;  %1239 = vmatpush.bf16.msra.mxu3 %v2614_v39  ;;  %v3311_v22 = vld [vmem:[%s4830_s0 + $0x1d4] sm:$0xf]  ;;  %v2783_v23 = vld [vmem:[%s4830_s0 + $0x1d8] sm:$0xf0]  ;;  %v2650_v26 = vor.u32 %v3277_v17, %v2647_v18  ;;  %v2722_v29 = vor.u32 %v3295_v19, %v2719_v21  ;;  %v3293_v33 = vld [vmem:[%s4830_s0 + $0x144] sm:$0xf] }
  0x47   : > { %v3259_v27 = vld [vmem:[%s4830_s0 + $0x34] sm:$0xf]  ;;  %v2575_v28 = vld [vmem:[%s4830_s0 + $0x38] sm:$0xf0]  ;;  %v2786_v30 = vor.u32 %v3311_v22, %v2783_v23  ;;  %v2711_v34 = vld [vmem:[%s4830_s0 + $0x148] sm:$0xf0] }
  0x48   : > { %v3275_v31 = vld [vmem:[%s4830_s0 + $0xb4] sm:$0xf]  ;;  %v2639_v32 = vld [vmem:[%s4830_s0 + $0xb8] sm:$0xf0]  ;;  %v3309_v35 = vld [vmem:[%s4830_s0 + $0x1c4] sm:$0xf]  ;;  %v2578_v37 = vor.u32 %v3259_v27, %v2575_v28 }
  0x49   : > { %1251 = vmatpush.bf16.msrb.mxu0 %v2686_v40  ;;  %1264 = vmatpush.bf16.msrb.mxu1 %v2750_v41  ;;  %v2775_v36 = vld [vmem:[%s4830_s0 + $0x1c8] sm:$0xf0]  ;;  %v2642_v38 = vor.u32 %v3275_v31, %v2639_v32  ;;  %v3257_v39 = vld [vmem:[%s4830_s0 + $0x24] sm:$0xf]  ;;  %v2714_v41 = vor.u32 %v3293_v33, %v2711_v34  ;;  %v3307_v47 = vld [vmem:[%s4830_s0 + $0x1b4] sm:$0xf] }
  0x4a   : > { %1271 = vmatpush.bf16.msrb.mxu2 %v2610_v45  ;;  %1284 = vmatpush.bf16.msrb.mxu3 %v2674_v46  ;;  %v2567_v40 = vld [vmem:[%s4830_s0 + $0x28] sm:$0xf0]  ;;  %v2778_v42 = vor.u32 %v3309_v35, %v2775_v36  ;;  %v3273_v43 = vld [vmem:[%s4830_s0 + $0xa4] sm:$0xf]  ;;  %v3291_v45 = vld [vmem:[%s4830_s0 + $0x134] sm:$0xf] }
  0x4b   : > { %1227 = vmatmul.bf16.vlgmr.msra.gmra.mxu2 %v3938_v50  ;;  %1240 = vmatmul.bf16.vlgmr.msra.gmra.mxu3 %v3940_v51  ;;  %v2631_v44 = vld [vmem:[%s4830_s0 + $0xa8] sm:$0xf0]  ;;  %v2703_v46 = vld [vmem:[%s4830_s0 + $0x138] sm:$0xf0]  ;;  %v2570_v49 = vor.u32 %v3257_v39, %v2567_v40  ;;  %v3255_v53 = vld [vmem:[%s4830_s0 + $0x14] sm:$0xf] }
  0x4c   : > { %v2767_v48 = vld [vmem:[%s4830_s0 + $0x1b8] sm:$0xf0]  ;;  %v2634_v52 = vor.u32 %v3273_v43, %v2631_v44  ;;  %v2706_v55 = vor.u32 %v3291_v45, %v2703_v46  ;;  %v3271_v57 = vld [vmem:[%s4830_s0 + $0x94] sm:$0xf]  ;;  %v3253_v63 = vld [vmem:[%s4830_s0 + $0x4] sm:$0xf] }
  0x4d   : > { %1252 = vmatpush.bf16.msrb.mxu0 %v2678_v59  ;;  %1265 = vmatpush.bf16.msrb.mxu1 %v2742_v60  ;;  %v2559_v54 = vld [vmem:[%s4830_s0 + $0x18] sm:$0xf0]  ;;  %v2770_v56 = vor.u32 %v3307_v47, %v2767_v48  ;;  %v3289_v59 = vld [vmem:[%s4830_s0 + $0x124] sm:$0xf]  ;;  %v2695_v60 = vld [vmem:[%s4830_s0 + $0x128] sm:$0xf0] }
  0x4e   : > { %1272 = vmatpush.bf16.msrb.mxu2 %v2602_v61  ;;  %1285 = vmatpush.bf16.msrb.mxu3 %v2666_v62  ;;  %v2623_v58 = vld [vmem:[%s4830_s0 + $0x98] sm:$0xf0]  ;;  %v3305_v61 = vld [vmem:[%s4830_s0 + $0x1a4] sm:$0xf]  ;;  %v2759_v62 = vld [vmem:[%s4830_s0 + $0x1a8] sm:$0xf0]  ;;  %v2698_v3 = vor.u32 %v3289_v59, %v2695_v60 }
  0x4f   : > { %v2551_v0 = vld [vmem:[%s4830_s0 + $0x8] sm:$0xf0]  ;;  %v2762_v4 = vor.u32 %v3305_v61, %v2759_v62  ;;  %v3269_v5 = vld [vmem:[%s4830_s0 + $0x84] sm:$0xf]  ;;  %v3287_v7 = vld [vmem:[%s4830_s0 + $0x114] sm:$0xf] }
  0x50   : > { %1253 = vmatmul.bf16.vlgmr.msrb.gmra.mxu0 %v4002_v20  ;;  %1266 = vmatmul.bf16.vlgmr.msrb.gmra.mxu1 %v4013_v24  ;;  %v2615_v6 = vld [vmem:[%s4830_s0 + $0x88] sm:$0xf0]  ;;  %v2687_v8 = vld [vmem:[%s4830_s0 + $0x118] sm:$0xf0]  ;;  %v3303_v9 = vld [vmem:[%s4830_s0 + $0x194] sm:$0xf]  ;;  %v2554_v13 = vor.u32 %v3253_v63, %v2551_v0 }
  0x51   : > { %1297 = vmatpush.bf16.msra.mxu0 %v2738_v1  ;;  %1310 = vmatpush.bf16.msra.mxu1 %v2802_v2  ;;  %v2562_v1 = vor.u32 %v3255_v53, %v2559_v54  ;;  %v2626_v2 = vor.u32 %v3271_v57, %v2623_v58  ;;  %v2751_v10 = vld [vmem:[%s4830_s0 + $0x198] sm:$0xf0]  ;;  %v2618_v14 = vor.u32 %v3269_v5, %v2615_v6  ;;  %v3285_v17 = vld [vmem:[%s4830_s0 + $0x104] sm:$0xf]  ;;  %v2679_v18 = vld [vmem:[%s4830_s0 + $0x108] sm:$0xf0] }
  0x52   : > { %1273 = vmatpush.bf16.msrb.mxu2 %v2594_v11  ;;  %1286 = vmatpush.bf16.msrb.mxu3 %v2658_v12  ;;  %v2813_v11 = vld [vmem:[%s4834_s24 + $0x10] sm:$0xf]  ;;  %v3320_v12 = vld [vmem:[%s4835_s26 + $0x14] sm:$0xf0]  ;;  %v3301_v19 = vld [vmem:[%s4830_s0 + $0x184] sm:$0xf] }
  0x53   : > { %v2743_v21 = vld [vmem:[%s4830_s0 + $0x188] sm:$0xf0]  ;;  %v2814_v22 = vor.u32 %v3320_v12, %v2813_v11  ;;  %v2805_v23 = vld [vmem:[%s4835_s26] sm:$0xf]  ;;  %v3336_v27 = vld [vmem:[%s4836_s8 + $0x74] sm:$0xf0] }
  0x54   : > { %v3335_v28 = vld [vmem:[%s4836_s8 + $0x74] sm:$0xf]  ;;  %v2746_v31 = vor.u32 %v3301_v19, %v2743_v21  ;;  %v2871_v35 = vld [vmem:[%s4836_s8 + $0x60] sm:$0xf]  ;;  %v3334_v36 = vld [vmem:[%s4836_s8 + $0x64] sm:$0xf0] }
  0x55   : > { %1298 = vmatpush.bf16.msra.mxu0 %v2730_v15  ;;  %1311 = vmatpush.bf16.msra.mxu1 %v2794_v16  ;;  %v2690_v15 = vor.u32 %v3287_v7, %v2687_v8  ;;  %v2754_v16 = vor.u32 %v3303_v9, %v2751_v10  ;;  %v2863_v39 = vld [vmem:[%s4836_s8 + $0x50] sm:$0xf]  ;;  %v3332_v40 = vld [vmem:[%s4836_s8 + $0x54] sm:$0xf0]  ;;  %v2855_v45 = vld [vmem:[%s4836_s8 + $0x40] sm:$0xf] }
  0x56   : > { %1274 = vmatpush.bf16.msrb.mxu2 %v2586_v25  ;;  %1287 = vmatpush.bf16.msrb.mxu3 %v2650_v26  ;;  %v3318_v25 = vld [vmem:[%s4835_s26 + $0x4] sm:$0xf0]  ;;  %v2879_v26 = vld [vmem:[%s4836_s8 + $0x70] sm:$0xf]  ;;  %v2864_v43 = vor.u32 %v3332_v40, %v2863_v39  ;;  %v2857_v46 = vld [vmem:[%s4836_s8 + $0x48] sm:$0xf0] }
  0x57   : > { %v2806_v32 = vor.u32 %v3318_v25, %v2805_v23  ;;  %v2880_v33 = vor.u32 %v3336_v27, %v2879_v26  ;;  %v3327_v53 = vld [vmem:[%s4836_s8 + $0x34] sm:$0xf]  ;;  %v2849_v54 = vld [vmem:[%s4836_s8 + $0x38] sm:$0xf0]  ;;  %v2839_v57 = vld [vmem:[%s4836_s8 + $0x20] sm:$0xf] }
  0x58   : > { %v3326_v58 = vld [vmem:[%s4836_s8 + $0x24] sm:$0xf0]  ;;  %v3325_v59 = vld [vmem:[%s4836_s8 + $0x24] sm:$0xf]  ;;  %v2841_v60 = vld [vmem:[%s4836_s8 + $0x28] sm:$0xf0] }
  0x59   : > { %1299 = vmatpush.bf16.msra.mxu0 %v2722_v29  ;;  %1312 = vmatpush.bf16.msra.mxu1 %v2786_v30  ;;  %v2881_v29 = vld [vmem:[%s4836_s8 + $0x78] sm:$0xf0]  ;;  %v2682_v30 = vor.u32 %v3285_v17, %v2679_v18  ;;  %v2840_v61 = vor.u32 %v3326_v58, %v2839_v57  ;;  %v2844_v62 = vor.u32 %v3325_v59, %v2841_v60  ;;  %v3319_v63 = vld [vmem:[%s4835_s26 + $0x14] sm:$0xf]  ;;  %v4235_v8 = vld [vmem:[%s751_s22] sm:$0xf] }
  0x5a   : > { %1275 = vmatpush.bf16.msrb.mxu2 %v2578_v37  ;;  %1288 = vmatpush.bf16.msrb.mxu3 %v2642_v38  ;;  %v2884_v34 = vor.u32 %v3335_v28, %v2881_v29  ;;  %v3333_v37 = vld [vmem:[%s4836_s8 + $0x64] sm:$0xf]  ;;  %v2873_v38 = vld [vmem:[%s4836_s8 + $0x68] sm:$0xf0]  ;;  %v2815_v0 = vld [vmem:[%s4835_s26 + $0x18] sm:$0xf0] }
  0x5b   : > { %v2833_v5 = vld [vmem:[%s4836_s8 + $0x18] sm:$0xf0]  ;;  %v3317_v9 = vld [vmem:[%s4835_s26 + $0x4] sm:$0xf]  ;;  %v2807_v10 = vld [vmem:[%s4835_s26 + $0x8] sm:$0xf0] }
  0x5c   : > { %v2823_v11 = vld [vmem:[%s4836_s8] sm:$0xf]  ;;  %v3322_v12 = vld [vmem:[%s4836_s8 + $0x4] sm:$0xf0]  ;;  %v2943_v18 = vld [vmem:[%s4836_s8 + $0xf0] sm:$0xf] }
  0x5d   : > { %1300 = vmatpush.bf16.msra.mxu0 %v2714_v41  ;;  %1313 = vmatpush.bf16.msra.mxu1 %v2778_v42  ;;  %v3331_v41 = vld [vmem:[%s4836_s8 + $0x54] sm:$0xf]  ;;  %v2865_v42 = vld [vmem:[%s4836_s8 + $0x58] sm:$0xf0]  ;;  %v3352_v19 = vld [vmem:[%s4836_s8 + $0xf4] sm:$0xf0] }
  0x5e   : > { %1276 = vmatpush.bf16.msrb.mxu2 %v2570_v49  ;;  %1289 = vmatpush.bf16.msrb.mxu3 %v2634_v52  ;;  %v2868_v44 = vor.u32 %v3331_v41, %v2865_v42  ;;  %v2847_v49 = vld [vmem:[%s4836_s8 + $0x30] sm:$0xf]  ;;  %v3328_v52 = vld [vmem:[%s4836_s8 + $0x34] sm:$0xf0]  ;;  %v3351_v21 = vld [vmem:[%s4836_s8 + $0xf4] sm:$0xf] }
  0x5f   : > { %v2945_v23 = vld [vmem:[%s4836_s8 + $0xf8] sm:$0xf0]  ;;  %v3007_v25 = vld [vmem:[%s4779_s10 + $0x70] sm:$0xf]  ;;  %v3368_v26 = vld [vmem:[%s4779_s10 + $0x74] sm:$0xf0] }
  0x60   : > { %v2948_v27 = vor.u32 %v3351_v21, %v2945_v23  ;;  %v3008_v28 = vor.u32 %v3368_v26, %v3007_v25  ;;  %v3367_v29 = vld [vmem:[%s4779_s10 + $0x74] sm:$0xf]  ;;  %v3365_v39 = vld [vmem:[%s4779_s10 + $0x64] sm:$0xf]  ;;  %v3001_v40 = vld [vmem:[%s4779_s10 + $0x68] sm:$0xf0] }
  0x61   : > { %1301 = vmatpush.bf16.msra.mxu0 %v2706_v55  ;;  %1314 = vmatpush.bf16.msra.mxu1 %v2770_v56  ;;  %v2848_v55 = vor.u32 %v3328_v52, %v2847_v49  ;;  %v2852_v56 = vor.u32 %v3327_v53, %v2849_v54  ;;  %v3004_v41 = vor.u32 %v3365_v39, %v3001_v40  ;;  %v2927_v42 = vld [vmem:[%s4836_s8 + $0xd0] sm:$0xf]  ;;  %v3363_v49 = vld [vmem:[%s4779_s10 + $0x54] sm:$0xf]  ;;  %v2993_v52 = vld [vmem:[%s4779_s10 + $0x58] sm:$0xf0] }
  0x62   : > { %1277 = vmatpush.bf16.msrb.mxu2 %v2562_v1  ;;  %1290 = vmatpush.bf16.msrb.mxu3 %v2626_v2  ;;  %v2831_v1 = vld [vmem:[%s4836_s8 + $0x10] sm:$0xf]  ;;  %v2818_v2 = vor.u32 %v3319_v63, %v2815_v0  ;;  %v2996_v53 = vor.u32 %v3363_v49, %v2993_v52  ;;  %v2919_v54 = vld [vmem:[%s4836_s8 + $0xc0] sm:$0xf]  ;;  %v2921_v58 = vld [vmem:[%s4836_s8 + $0xc8] sm:$0xf0] }
  0x63   : > { %v2983_v59 = vld [vmem:[%s4779_s10 + $0x40] sm:$0xf]  ;;  %v3362_v60 = vld [vmem:[%s4779_s10 + $0x44] sm:$0xf0]  ;;  %v3361_v63 = vld [vmem:[%s4779_s10 + $0x44] sm:$0xf] }
  0x64   : > { %v2985_v0 = vld [vmem:[%s4779_s10 + $0x48] sm:$0xf0]  ;;  %v3358_v23 = vld [vmem:[%s4779_s10 + $0x24] sm:$0xf0]  ;;  %v3357_v25 = vld [vmem:[%s4779_s10 + $0x24] sm:$0xf] }
  0x65   : > { %1302 = vmatpush.bf16.msra.mxu0 %v2698_v3  ;;  %1315 = vmatpush.bf16.msra.mxu1 %v2762_v4  ;;  %v3324_v3 = vld [vmem:[%s4836_s8 + $0x14] sm:$0xf0]  ;;  %v3323_v4 = vld [vmem:[%s4836_s8 + $0x14] sm:$0xf]  ;;  %v2887_v40 = vld [vmem:[%s4836_s8 + $0x80] sm:$0xf] }
  0x66   : > { %1278 = vmatpush.bf16.msrb.mxu2 %v2554_v13  ;;  %1291 = vmatpush.bf16.msrb.mxu3 %v2618_v14  ;;  %v2832_v6 = vor.u32 %v3324_v3, %v2831_v1  ;;  %v2836_v7 = vor.u32 %v3323_v4, %v2833_v5  ;;  %v2810_v13 = vor.u32 %v3317_v9, %v2807_v10  ;;  %v3344_v3 = vld [vmem:[%s4836_s8 + $0xb4] sm:$0xf0]  ;;  %v3343_v4 = vld [vmem:[%s4836_s8 + $0xb4] sm:$0xf]  ;;  %s4839_s22 = sld [smem:[#allocation15_spill]] }
  0x67   : > { %v2824_v14 = vor.u32 %v3322_v12, %v2823_v11  ;;  %v2988_v1 = vor.u32 %v3361_v63, %v2985_v0  ;;  %v3360_v9 = vld [vmem:[%s4779_s10 + $0x34] sm:$0xf0]  ;;  %v3359_v12 = vld [vmem:[%s4779_s10 + $0x34] sm:$0xf]  ;;  %v3381_v63 = vld [vmem:[%s4779_s10 + $0xe4] sm:$0xf] }
  0x68   : > { %v3384_v49 = vld [vmem:[%s4779_s10 + $0xf4] sm:$0xf0]  ;;  %v3383_v52 = vld [vmem:[%s4779_s10 + $0xf4] sm:$0xf]  ;;  %s4840_s9 = sld [smem:[#allocation22_spill]] }
  0x69   : > { %1303 = vmatpush.bf16.msra.mxu0 %v2690_v15  ;;  %1316 = vmatpush.bf16.msra.mxu1 %v2754_v16  ;;  %v3321_v15 = vld [vmem:[%s4836_s8 + $0x4] sm:$0xf]  ;;  %v2825_v16 = vld [vmem:[%s4836_s8 + $0x8] sm:$0xf0]  ;;  %s4842_s6 = sld [smem:[#allocation8_spill]] }
  0x6a   : > { %1365 = vmatpush.bf16.msra.mxu2 %v2814_v22  ;;  %1292 = vmatmul.bf16.vlgmr.msrb.gmra.mxu3 %v3940_v51  ;;  %v2876_v51 = vor.u32 %v3333_v37, %v2873_v38  ;;  %v2828_v17 = vor.u32 %v3321_v15, %v2825_v16  ;;  %v2944_v22 = vor.u32 %v3352_v19, %v2943_v18  ;;  %v2999_v37 = vld [vmem:[%s4779_s10 + $0x60] sm:$0xf]  ;;  %v3366_v38 = vld [vmem:[%s4779_s10 + $0x64] sm:$0xf0]  ;;  %v2905_v18 = vld [vmem:[%s4836_s8 + $0xa8] sm:$0xf0] }
  0x6b   : > { %1279 = vmatmul.bf16.vlgmr.msrb.gmra.mxu2 %v3938_v50  ;;  %v2872_v50 = vor.u32 %v3334_v36, %v2871_v35  ;;  %1378 = vmatpush.bf16.msra.mxu3 %v2818_v2  ;;  %v2937_v36 = vld [vmem:[%s4836_s8 + $0xe8] sm:$0xf0]  ;;  %v2911_v2 = vld [vmem:[%s4836_s8 + $0xb0] sm:$0xf]  ;;  %v3342_v16 = vld [vmem:[%s4836_s8 + $0xa4] sm:$0xf0] }
  0x6c   : > { %v2912_v5 = vor.u32 %v3344_v3, %v2911_v2  ;;  %s755_s23 = scalar_lea.vmem %s4839_s22, %s4838_s28  ;;  %s4841_s28 = sld [smem:[#allocation20_spill]] }
  0x6d   : > { %1304 = vmatpush.bf16.msra.mxu0 %v2682_v30  ;;  %1317 = vmatpush.bf16.msra.mxu1 %v2746_v31  ;;  %v3009_v30 = vld [vmem:[%s4779_s10 + $0x78] sm:$0xf0]  ;;  %s4843_s3 = sld [smem:[#allocation23_spill]]  ;;  %s740_s22 = sand.u32 1, %s3526_s30  }
  0x6e   : > { %1366 = vmatpush.bf16.msra.mxu2 %v2806_v32  ;;  %v3012_v31 = vor.u32 %v3367_v29, %v3009_v30  ;;  %v2935_v32 = vld [vmem:[%s4836_s8 + $0xe0] sm:$0xf]  ;;  %v3340_v29 = vld [vmem:[%s4836_s8 + $0x94] sm:$0xf0]  ;;  %s2539_s20 = sshll.u32 %s740_s22, 3  ;;  %s4844_s24 = sld [smem:[#allocation25_spill]] }
  0x6f   : > { %1379 = vmatpush.bf16.msra.mxu3 %v2810_v13  ;;  %v2977_v13 = vld [vmem:[%s4779_s10 + $0x38] sm:$0xf0]  ;;  %s3249_s27 = sshll.u32 %s4842_s6, 3  ;;  %s742_s29 = scalar_lea.vmem [#allocation2], %s2539_s20 }
  0x70   : > { %1305 = vmatmul.bf16.vlgmr.msra.gmra.mxu0 %v4002_v20  ;;  %1318 = vmatmul.bf16.vlgmr.msra.gmra.mxu1 %v4013_v24  ;;  %v3330_v20 = vld [vmem:[%s4836_s8 + $0x44] sm:$0xf0]  ;;  %v3329_v24 = vld [vmem:[%s4836_s8 + $0x44] sm:$0xf]  ;;  %v2980_v15 = vor.u32 %v3359_v12, %v2977_v13  ;;  %s2425_s6 = scalar_lea.sflag [#allocation3], %s740_s22 }
  0x71   : > { %1583 = vmatpush.bf16.msrb.mxu0 %v2880_v33  ;;  %v2856_v47 = vor.u32 %v3330_v20, %v2855_v45  ;;  %v2860_v48 = vor.u32 %v3329_v24, %v2857_v46  ;;  %1596 = vmatpush.bf16.msrb.mxu1 %v2944_v22  ;;  %v3350_v33 = vld [vmem:[%s4836_s8 + $0xe4] sm:$0xf0]  ;;  %v2929_v20 = vld [vmem:[%s4836_s8 + $0xd8] sm:$0xf0]  ;;  %v2991_v24 = vld [vmem:[%s4779_s10 + $0x50] sm:$0xf] }
  0x72   : > { %1609 = vmatpush.bf16.msrb.mxu2 %v2884_v34  ;;  %v3349_v34 = vld [vmem:[%s4836_s8 + $0xe4] sm:$0xf]  ;;  %v2936_v35 = vor.u32 %v3350_v33, %v2935_v32  ;;  %v3364_v46 = vld [vmem:[%s4779_s10 + $0x54] sm:$0xf0]  ;;  %v2967_v22 = vld [vmem:[%s4779_s10 + $0x20] sm:$0xf] }
  0x73   : > { %1622 = vmatpush.bf16.msrb.mxu3 %v2948_v27  ;;  %v2968_v26 = vor.u32 %v3358_v23, %v2967_v22  ;;  %v2969_v27 = vld [vmem:[%s4779_s10 + $0x28] sm:$0xf0]  ;;  %v2897_v32 = vld [vmem:[%s4836_s8 + $0x98] sm:$0xf0]  ;;  %v2959_v33 = vld [vmem:[%s4779_s10 + $0x10] sm:$0xf] }
  0x74   : > { %v2972_v30 = vor.u32 %v3357_v25, %v2969_v27  ;;  %v3049_v22 = vld [vmem:[%s4779_s10 + $0xc8] sm:$0xf0]  ;;  %s2435_s2 = scalar_lea.hbm %s4844_s24, %s3249_s27 }
  0x75   : > { %1584 = vmatpush.bf16.msrb.mxu0 %v2872_v50  ;;  %v2940_v50 = vor.u32 %v3349_v34, %v2937_v36  ;;  %1597 = vmatpush.bf16.msrb.mxu1 %v2936_v35  ;;  %s2439_s0 = sshll.u32 %s2435_s2, 4  ;;  %s2440_s0 = int_to_ptr.hbm [resolvable:$true] %s2439_s0 }
  0x76   : > { %1610 = vmatpush.bf16.msrb.mxu2 %v2876_v51  ;;  %v3000_v51 = vor.u32 %v3366_v38, %v2999_v37  ;;  %v3356_v37 = vld [vmem:[%s4779_s10 + $0x14] sm:$0xf0]  ;;  %v3355_v38 = vld [vmem:[%s4779_s10 + $0x14] sm:$0xf] }
  0x77   : > { %1623 = vmatpush.bf16.msrb.mxu3 %v2940_v50  ;;  %v2961_v50 = vld [vmem:[%s4779_s10 + $0x18] sm:$0xf0]  ;;  %v2960_v39 = vor.u32 %v3356_v37, %v2959_v33 }
  0x78   : > { %v3041_v33 = vld [vmem:[%s4779_s10 + $0xb8] sm:$0xf0] }
  0x79   : > { %1585 = vmatpush.bf16.msrb.mxu0 %v2864_v43  ;;  %v3348_v43 = vld [vmem:[%s4836_s8 + $0xd4] sm:$0xf0] }
  0x7a   : > { %1611 = vmatpush.bf16.msrb.mxu2 %v2868_v44  ;;  %2820 = vmatmul.msk.bf16.vlgmr.msra.gmra.mxu3 %vm1355_vm2, %v4235_v8  ;;  %v3347_v44 = vld [vmem:[%s4836_s8 + $0xd4] sm:$0xf]  ;;  %v2928_v45 = vor.u32 %v3348_v43, %v2927_v42  ;;  %v3337_v42 = vld [vmem:[%s4836_s8 + $0x84] sm:$0xf]  ;;  %v2964_v43 = vor.u32 %v3355_v38, %v2961_v50  ;;  %v3033_v50 = vld [vmem:[%s4779_s10 + $0xa8] sm:$0xf0] }
  0x7b   : > { %2819 = vmatmul.msk.bf16.vlgmr.msra.gmra.mxu2 %vm1355_vm2, %v4235_v8  ;;  %v3373_v38 = vld [vmem:[%s4779_s10 + $0xa4] sm:$0xf] }
  0x7c   : > { %1598 = vmatpush.bf16.msrb.mxu1 %v2928_v45  ;;  %v2951_v45 = vld [vmem:[%s4779_s10] sm:$0xf] }
  0x7d   : > { %1586 = vmatpush.bf16.msrb.mxu0 %v2856_v47  ;;  %v2932_v47 = vor.u32 %v3347_v44, %v2929_v20  ;;  %v2889_v44 = vld [vmem:[%s4836_s8 + $0x88] sm:$0xf0]  ;;  %v3354_v20 = vld [vmem:[%s4779_s10 + $0x4] sm:$0xf0] }
  0x7e   : > { %1612 = vmatpush.bf16.msrb.mxu2 %v2860_v48  ;;  %v2992_v48 = vor.u32 %v3364_v46, %v2991_v24  ;;  %v3353_v24 = vld [vmem:[%s4779_s10 + $0x4] sm:$0xf]  ;;  %v2953_v46 = vld [vmem:[%s4779_s10 + $0x8] sm:$0xf0] }
  0x7f   : > { %1624 = vmatpush.bf16.msrb.mxu3 %v2932_v47  ;;  %v3071_v47 = vld [vmem:[%s4779_s10 + $0xf0] sm:$0xf] }
  0x81   : > { %1587 = vmatpush.bf16.msrb.mxu0 %v2848_v55  ;;  %v3346_v55 = vld [vmem:[%s4836_s8 + $0xc4] sm:$0xf0] }
  0x82   : > { %1613 = vmatpush.bf16.msrb.mxu2 %v2852_v56  ;;  %v3345_v56 = vld [vmem:[%s4836_s8 + $0xc4] sm:$0xf]  ;;  %v2920_v57 = vor.u32 %v3346_v55, %v2919_v54  ;;  %v2892_v54 = vor.u32 %v3337_v42, %v2889_v44  ;;  %v2952_v55 = vor.u32 %v3354_v20, %v2951_v45  ;;  %v3023_v44 = vld [vmem:[%s4779_s10 + $0x90] sm:$0xf]  ;;  %v3372_v45 = vld [vmem:[%s4779_s10 + $0x94] sm:$0xf0] }
  0x83   : > { %v3371_v20 = vld [vmem:[%s4779_s10 + $0x94] sm:$0xf] }
  0x84   : > { %1599 = vmatpush.bf16.msrb.mxu1 %v2920_v57  ;;  %v3072_v57 = vor.u32 %v3384_v49, %v3071_v47  ;;  %v3370_v49 = vld [vmem:[%s4779_s10 + $0x84] sm:$0xf0] }
  0x85   : > { %1588 = vmatpush.bf16.msrb.mxu0 %v2840_v61  ;;  %v2924_v61 = vor.u32 %v3345_v56, %v2921_v58  ;;  %v2956_v56 = vor.u32 %v3353_v24, %v2953_v46  ;;  %v3025_v24 = vld [vmem:[%s4779_s10 + $0x98] sm:$0xf0]  ;;  %v3024_v46 = vor.u32 %v3372_v45, %v3023_v44 }
  0x86   : > { %1614 = vmatpush.bf16.msrb.mxu2 %v2844_v62  ;;  %v2984_v62 = vor.u32 %v3362_v60, %v2983_v59  ;;  %v3028_v47 = vor.u32 %v3371_v20, %v3025_v24 }
  0x87   : > { %1625 = vmatpush.bf16.msrb.mxu3 %v2924_v61  ;;  %v3063_v61 = vld [vmem:[%s4779_s10 + $0xe0] sm:$0xf] }
  0x88   : > { %1600 = vmatpush.bf16.msrb.mxu1 %v2912_v5  ;;  %v3055_v5 = vld [vmem:[%s4779_s10 + $0xd0] sm:$0xf] }
  0x89   : > { %1589 = vmatpush.bf16.msrb.mxu0 %v2832_v6  ;;  %v2913_v6 = vld [vmem:[%s4836_s8 + $0xb8] sm:$0xf0] }
  0x8a   : > { %1615 = vmatpush.bf16.msrb.mxu2 %v2836_v7  ;;  %v2975_v7 = vld [vmem:[%s4779_s10 + $0x30] sm:$0xf]  ;;  %v2916_v10 = vor.u32 %v3343_v4, %v2913_v6  ;;  %v3380_v6 = vld [vmem:[%s4779_s10 + $0xd4] sm:$0xf0] }
  0x8b   : > { %v2976_v11 = vor.u32 %v3360_v9, %v2975_v7  ;;  %v3379_v7 = vld [vmem:[%s4779_s10 + $0xd4] sm:$0xf] }
  0x8c   : > { %1626 = vmatpush.bf16.msrb.mxu3 %v2916_v10  ;;  %v3056_v10 = vor.u32 %v3380_v6, %v3055_v5 }
  0x8d   : > { %1590 = vmatpush.bf16.msrb.mxu0 %v2824_v14  ;;  %v2903_v14 = vld [vmem:[%s4836_s8 + $0xa0] sm:$0xf] }
  0x8e   : > { %1616 = vmatpush.bf16.msrb.mxu2 %v2828_v17  ;;  %v3341_v17 = vld [vmem:[%s4836_s8 + $0xa4] sm:$0xf]  ;;  %v2904_v19 = vor.u32 %v3342_v16, %v2903_v14  ;;  %v3047_v16 = vld [vmem:[%s4779_s10 + $0xc0] sm:$0xf] }
  0x8f   : > { %v2908_v21 = vor.u32 %v3341_v17, %v2905_v18  ;;  %v3378_v17 = vld [vmem:[%s4779_s10 + $0xc4] sm:$0xf0]  ;;  %v3377_v18 = vld [vmem:[%s4779_s10 + $0xc4] sm:$0xf] }
  0x90   : > { %1601 = vmatpush.bf16.msrb.mxu1 %v2904_v19  ;;  %v3052_v23 = vor.u32 %v3377_v18, %v3049_v22  ;;  %v3387_v18 = vld [vmem:[%s4781_s12 + $0x10] sm:$0xff]  ;;  %v1922_v22 = vld [vmem:[%s4782_s13] sm:$0xf] }
  0x91   : > { %1833 = vmatpush.bf16.msra.mxu0 %v3008_v28  ;;  %v2895_v28 = vld [vmem:[%s4836_s8 + $0x90] sm:$0xf]  ;;  %1627 = vmatpush.bf16.msrb.mxu3 %v2908_v21  ;;  %v3048_v21 = vor.u32 %v3378_v17, %v3047_v16  ;;  %v3388_v16 = vld [vmem:[%s4781_s12 + $0x18] sm:$0xff]  ;;  %v3397_v17 = vld [vmem:[%s4781_s12 + $0x60] sm:$0xff] }
  0x92   : > { %1859 = vmatpush.bf16.msra.mxu2 %v3012_v31  ;;  %v3339_v31 = vld [vmem:[%s4836_s8 + $0x94] sm:$0xf]  ;;  %v2896_v36 = vor.u32 %v3340_v29, %v2895_v28  ;;  %v3039_v28 = vld [vmem:[%s4779_s10 + $0xb0] sm:$0xf]  ;;  %v3376_v29 = vld [vmem:[%s4779_s10 + $0xb4] sm:$0xf0] }
  0x94   : > { %1602 = vmatpush.bf16.msrb.mxu1 %v2896_v36  ;;  %v3374_v36 = vld [vmem:[%s4779_s10 + $0xa4] sm:$0xf0] }
  0x95   : > { %1834 = vmatpush.bf16.msra.mxu0 %v3000_v51  ;;  %v2900_v51 = vor.u32 %v3339_v31, %v2897_v32  ;;  %v3040_v32 = vor.u32 %v3376_v29, %v3039_v28 }
  0x96   : > { %1860 = vmatpush.bf16.msra.mxu2 %v3004_v41  ;;  %v3338_v41 = vld [vmem:[%s4836_s8 + $0x84] sm:$0xf0]  ;;  %s3486_s8 = sshra.s32 %s2440_s0, 4  ;;  %s3487_s8 = int_to_ptr.hbm [resolvable:$true] %s3486_s8 }
  0x97   : > { %1628 = vmatpush.bf16.msrb.mxu3 %v2900_v51  ;;  %v4530_v51 = vld [vmem:[%s755_s23] sm:$0xff]  ;;  %s4845_s23 = smov %s4844_s24 }
  0x98   : > { %s3492_s20 = scalar_lea.hbm %s4845_s23, 16  ;;  %p3493_p0 = scmp.lt.s32.totalorder %s3487_s8, %s4845_s23 }
  0x99   : > { %1835 = vmatpush.bf16.msra.mxu0 %v2992_v48  ;;  %v2888_v48 = vor.u32 %v3338_v41, %v2887_v40  ;;  %v765_v41 = vsel %vm764_vm1, %v4530_v51, inf }
  0x9a   : > { %1861 = vmatpush.bf16.msra.mxu2 %v2996_v53  ;;  %v3073_v53 = vld [vmem:[%s4779_s10 + $0xf8] sm:$0xf0]  ;;  %766 = vmin.xlane.f32.xlu0 %v765_v41 }
  0x9b   : > { %v3076_v58 = vor.u32 %v3383_v52, %v3073_v53  ;;  %1603 = vmatpush.bf16.msrb.mxu1 %v2888_v48  ;;  %1629 = vmatpush.bf16.msrb.mxu3 %v2892_v54  ;;  %v3015_v48 = vld [vmem:[%s4779_s10 + $0x80] sm:$0xf]  ;;  %v3369_v52 = vld [vmem:[%s4779_s10 + $0x84] sm:$0xf]  ;;  %v3017_v53 = vld [vmem:[%s4779_s10 + $0x88] sm:$0xf0] }
  0x9c   : > { %v3016_v54 = vor.u32 %v3370_v49, %v3015_v48 }
  0x9d   : > { %1836 = vmatpush.bf16.msra.mxu0 %v2984_v62  ;;  %v3382_v62 = vld [vmem:[%s4779_s10 + $0xe4] sm:$0xf0] }
  0x9e   : > { %1862 = vmatpush.bf16.msra.mxu2 %v2988_v1  ;;  %v3064_v0 = vor.u32 %v3382_v62, %v3063_v61  ;;  %v3065_v1 = vld [vmem:[%s4779_s10 + $0xe8] sm:$0xf0] }
  0x9f   : > { %1846 = vmatpush.bf16.msra.mxu1 %v3072_v57  ;;  %1872 = vmatpush.bf16.msra.mxu3 %v3076_v58  ;;  %v3068_v2 = vor.u32 %v3381_v63, %v3065_v1 }
  0xa1   : > { %1837 = vmatpush.bf16.msra.mxu0 %v2976_v11  ;;  %v3057_v11 = vld [vmem:[%s4779_s10 + $0xd8] sm:$0xf0] }
  0xa2   : > { %1863 = vmatpush.bf16.msra.mxu2 %v2980_v15  ;;  %v3060_v12 = vor.u32 %v3379_v7, %v3057_v11  ;;  %v3392_v7 = vld [vmem:[%s4781_s12 + $0x38] sm:$0xff]  ;;  %v3390_v11 = vld [vmem:[%s4781_s12 + $0x28] sm:$0xff] }
  0xa3   : > { %1847 = vmatpush.bf16.msra.mxu1 %v3064_v0  ;;  %1873 = vmatpush.bf16.msra.mxu3 %v3068_v2 }
  0xa5   : > { %1838 = vmatpush.bf16.msra.mxu0 %v2968_v26 }
  0xa6   : > { %1864 = vmatpush.bf16.msra.mxu2 %v2972_v30  ;;  %v3375_v30 = vld [vmem:[%s4779_s10 + $0xb4] sm:$0xf] }
  0xa7   : > { %1848 = vmatpush.bf16.msra.mxu1 %v3056_v10  ;;  %1874 = vmatpush.bf16.msra.mxu3 %v3060_v12  ;;  %v3044_v37 = vor.u32 %v3375_v30, %v3041_v33  ;;  %v3400_v10 = vld [vmem:[%s4781_s12 + $0x78] sm:$0xff]  ;;  %v3399_v12 = vld [vmem:[%s4781_s12 + $0x70] sm:$0xff]  ;;  %v3394_v33 = vld [vmem:[%s4781_s12 + $0x48] sm:$0xff] }
  0xa8   : > { %v3395_v30 = vld [vmem:[%s4781_s12 + $0x50] sm:$0xff] }
  0xa9   : > { %1839 = vmatpush.bf16.msra.mxu0 %v2960_v39 }
  0xaa   : > { %1865 = vmatpush.bf16.msra.mxu2 %v2964_v43  ;;  %v3036_v43 = vor.u32 %v3373_v38, %v3033_v50 }
  0xab   : > { %1849 = vmatpush.bf16.msra.mxu1 %v3048_v21  ;;  %1875 = vmatpush.bf16.msra.mxu3 %v3052_v23  ;;  %v3396_v23 = vld [vmem:[%s4781_s12 + $0x58] sm:$0xff] }
  0xad   : > { %1840 = vmatpush.bf16.msra.mxu0 %v2952_v55  ;;  %v3020_v55 = vor.u32 %v3369_v52, %v3017_v53 }
  0xae   : > { %1866 = vmatpush.bf16.msra.mxu2 %v2956_v56 }
  0xaf   : > { %1850 = vmatpush.bf16.msra.mxu1 %v3040_v32  ;;  %1876 = vmatpush.bf16.msra.mxu3 %v3044_v37  ;;  %v3385_v32 = vld [vmem:[%s4781_s12] sm:$0xff] }
  0xb3   : > { %1877 = vmatpush.bf16.msra.mxu3 %v3036_v43 }
  0xb7   : > { %1878 = vmatpush.bf16.msra.mxu3 %v3028_v47 }
  0xb9   : > { %v868_v34 = vpop.f32.mrf.mxu0  ;;  %v4418_v35 = vpop.f32.mrf.mxu1 }
  0xbb   : > { %1879 = vmatpush.bf16.msra.mxu3 %v3020_v55 }
  0xc1   : > { %v870_v59 = vpop.f32.mrf.mxu0  ;;  %v883_v60 = vpop.f32.mrf.mxu1 }
  0xcd   : > { %v1254_v14 = vpop.f32.mrf.mxu0  ;;  %v1267_v15 = vpop.f32.mrf.mxu1 }
  0xce   : > { %v1228_v3 = vpop.f32.mrf.mxu2  ;;  %v1241_v4 = vpop.f32.mrf.mxu3 }
  0xcf   : > { %v1229_v9 = vadd.f32 %v1228_v3, %v868_v34  ;;  %v3031_v34 = vld [vmem:[%s4779_s10 + $0xa0] sm:$0xf] }
  0xd0   : > { %v3032_v42 = vor.u32 %v3374_v36, %v3031_v34  ;;  %v3393_v36 = vld [vmem:[%s4781_s12 + $0x40] sm:$0xff] }
  0xd1   : > { %v1242_v13 = vadd.f32 %v1241_v4, %v1229_v9 }
  0xd2   : > { %1851 = vmatpush.bf16.msra.mxu1 %v3032_v42 }
  0xd3   : > { %v1255_v19 = vadd.f32 %v1254_v14, %v1242_v13  ;;  %v3389_v14 = vld [vmem:[%s4781_s12 + $0x20] sm:$0xff] }
  0xd5   : > { %v1268_v25 = vadd.f32 %v1267_v15, %v1255_v19  ;;  %v1256_v39 = vpop.f32.mrf.mxu0  ;;  %v1269_v40 = vpop.f32.mrf.mxu1  ;;  %v3398_v15 = vld [vmem:[%s4781_s12 + $0x68] sm:$0xff]  ;;  %v768_v19 = vlaneseq }
  0xd6   : > { %v1230_v26 = vpop.f32.mrf.mxu2  ;;  %v1243_v27 = vpop.f32.mrf.mxu3  ;;  %1852 = vmatpush.bf16.msra.mxu1 %v3024_v46  ;;  %v1329_v40 = vld [vmem:[%s4841_s28] sm:$0x3]  ;;  %s4847_s28 = sld [smem:[#allocation24_spill]] }
  0xd7   : > { %v1323_v31 = vpack.c.bf16 %v1268_v25, %v1268_v25  ;;  %v1927_v25 = vsel %vm852_vm0, %v1922_v22, 0  ;;  %v769_v26 = vand.u32 127, %v768_v19  ;;  %v3386_v27 = vld [vmem:[%s4781_s12 + $0x8] sm:$0xff]  ;;  %v1331_v43 = vperm.slane %v1329_v40, 0 }
  0xd8   : > { %v1332_v48 = vperm.slane %v1329_v40, 1  ;;  %v3416_v40 = vld [vmem:[%s4785_s16 + $0x60] sm:$0xff] }
  0xd9   : > { %1591 = vmatmul.bf16.vlgmr.msrb.gmra.mxu0 %v1323_v31  ;;  %1617 = vmatmul.bf16.vlgmr.msrb.gmra.mxu2 %v1323_v31  ;;  %vm770_vm4 = vcmp.eq.s32.totalorder %v769_v26, 0 }
  0xda   : > { %1853 = vmatpush.bf16.msra.mxu1 %v3016_v54  ;;  %2052 = vmatpush.bf16.msrb.mxu2 %v3400_v10  ;;  %v3401_v10 = vld [vmem:[%s4783_s14] sm:$0xff] }
  0xdb   : > { %1936 = vmatpush.bf16.msrb.mxu0 %v1927_v25 }
  0xde   : > { %2053 = vmatpush.bf16.msrb.mxu2 %v3399_v12 }
  0xe2   : > { %2054 = vmatpush.bf16.msrb.mxu2 %v3398_v15 }
  0xe6   : > { %2055 = vmatpush.bf16.msrb.mxu2 %v3397_v17 }
  0xe9   : > { %1841 = vmatmul.bf16.vlgmr.msra.gmra.mxu0 %v1323_v31  ;;  %1867 = vmatmul.bf16.vlgmr.msra.gmra.mxu2 %v1323_v31 }
  0xea   : > { %2056 = vmatpush.bf16.msrb.mxu2 %v3396_v23 }
  0xed   : > { %v1306_v56 = vpop.f32.mrf.mxu0  ;;  %v1319_v57 = vpop.f32.mrf.mxu1 }
  0xee   : > { %v1280_v58 = vpop.f32.mrf.mxu2  ;;  %v1293_v59 = vpop.f32.mrf.mxu3  ;;  %2057 = vmatpush.bf16.msrb.mxu2 %v3395_v30 }
  0xef   : > { %v1281_v60 = vadd.f32 %v1280_v58, %v4418_v35  ;;  %v3391_v35 = vld [vmem:[%s4781_s12 + $0x30] sm:$0xff] }
  0xf1   : > { %v1294_v61 = vadd.f32 %v1293_v59, %v1281_v60 }
  0xf2   : > { %2058 = vmatpush.bf16.msrb.mxu2 %v3394_v33  ;;  %v3411_v33 = vld [vmem:[%s4785_s16 + $0x38] sm:$0xff] }
  0xf3   : > { %v1307_v62 = vadd.f32 %v1306_v56, %v1294_v61 }
  0xf5   : > { %v1320_v63 = vadd.f32 %v1319_v57, %v1307_v62  ;;  %v1308_v0 = vpop.f32.mrf.mxu0  ;;  %v1321_v1 = vpop.f32.mrf.mxu1  ;;  %v1667_v57 = vld [vmem:[%s4780_s11] sm:$0x3] }
  0xf6   : > { %v1282_v2 = vpop.f32.mrf.mxu2  ;;  %v1295_v3 = vpop.f32.mrf.mxu3  ;;  %2059 = vmatpush.bf16.msrb.mxu2 %v3393_v36  ;;  %v1669_v60 = vperm.slane %v1667_v57, 0  ;;  %v1670_v1 = vperm.slane %v1667_v57, 1  ;;  %v3410_v36 = vld [vmem:[%s4785_s16 + $0x30] sm:$0xff] }
  0xf7   : > { %v1324_v4 = vpack.c.bf16 %v1320_v63, %v1320_v63 }
  0xf9   : > { %1604 = vmatmul.bf16.vlgmr.msrb.gmra.mxu1 %v1324_v4  ;;  %1630 = vmatmul.bf16.vlgmr.msrb.gmra.mxu3 %v1324_v4 }
  0xfa   : > { %2039 = vmatpush.bf16.msrb.mxu1 %v3392_v7  ;;  %2091 = vmatpush.bf16.msrb.mxu3 %v3401_v10  ;;  %v3422_v10 = vld [vmem:[%s4788_s19] sm:$0xff] }
  0xfe   : > { %v1368_v5 = vpop.f32.mrf.mxu2  ;;  %v4565_v9 = vpop.f32.mrf.mxu3  ;;  %2040 = vmatpush.bf16.msrb.mxu1 %v3391_v35 }
  0xff   : > { %v1369_v24 = vadd.f32 %v1368_v5, %v1331_v43  ;;  %v1382_v55 = vadd.f32 %v4565_v9, %v1332_v48 }
 0x102   : > { %2041 = vmatpush.bf16.msrb.mxu1 %v3390_v11 }
 0x106   : > { %v1370_v6 = vpop.f32.mrf.mxu2  ;;  %v1383_v13 = vpop.f32.mrf.mxu3  ;;  %2042 = vmatpush.bf16.msrb.mxu1 %v3389_v14 }
 0x109   : > { %1854 = vmatmul.bf16.vlgmr.msra.gmra.mxu1 %v1324_v4  ;;  %1880 = vmatmul.bf16.vlgmr.msra.gmra.mxu3 %v1324_v4 }
 0x10a   : > { %2043 = vmatpush.bf16.msrb.mxu1 %v3388_v16 }
 0x10d   : > { %v4591_v21 = vpop.xlane.xlu0 %766 }
 0x10e   : > { %vm771_vm3 = vcmp.gt.f32.partialorder %v4591_v21, 0.5  ;;  %2044 = vmatpush.bf16.msrb.mxu1 %v3387_v18  ;;  %v3466_v21 = vld [vmem:[%s4843_s3] ss:$0 sm:$0xff]  ;;  %s2437_s3 = sshll.u32 %s742_s29, 4  ;;  %s2438_s3 = int_to_ptr.vmem [resolvable:$true] %s2437_s3 }
 0x10f   : > { %vm774_vm5 = vmand %vm770_vm4, %vm771_vm3 }
 0x110   : > { %v775_v28 = vsel %vm774_vm5, 0.0, %v4530_v51  ;;  %v1417_v51 = vld [vmem:[%s4840_s9] sm:$0x3]  ;;  %s3488_s9 = scalar_lea.hbm %s3487_s8, 8 }
 0x111   : > { %v1921_v29 = vpack.c.bf16 %v775_v28, %v775_v28  ;;  %v1419_v42 = vperm.slane %v1417_v51, 0  ;;  %v1420_v46 = vperm.slane %v1417_v51, 1  ;;  %v3151_v28 = vld [vmem:[%s4784_s15 + $0x8] sm:$0xf0]  ;;  %p3489_p11 = scmp.ne.s32.totalorder %s3487_s8, %s3488_s9  ;;  %p3494_p1 = scmp.lt.s32.totalorder %s3492_s20, %s3488_s9 }
 0x112   : > { %2045 = vmatpush.bf16.msrb.mxu1 %v3386_v27  ;;  %v3402_v27 = vld [vmem:[%s4784_s15 + $0x4] sm:$0xf] }
 0x113   : > { %3077 = vmatmul.msk.bf16.vlgmr.msrb.gmra.mxu0 %vm764_vm1, %v1921_v29  ;;  %v3149_v29 = vld [vmem:[%s4784_s15] sm:$0xf]  ;;  %v3154_v30 = vor.u32 %v3402_v27, %v3151_v28  ;;  %p3490_p12 = pnand %p3489_p11, %p3694_p5  ;;  %p3495_p2 = por %p3494_p1, %p3493_p0 }
 0x115   : > { %2148 = vmatpush.bf16.msra.mxu3 %v3154_v30  ;;  %p3491_p13 = pneg %p3490_p12 }
 0x116   : > { %2046 = vmatpush.bf16.msrb.mxu1 %v3385_v32 }
 0x117   : > { %p3496_p3 = pnand %p3495_p2, %p3491_p13 }
 0x156   : > { %v1592_v31 = vpop.f32.mrf.mxu0 }
 0x157   : > { %v1593_v44 = vadd.f32 %v1592_v31, %v1419_v42  ;;  %v3403_v31 = vld [vmem:[%s4784_s15 + $0x4] sm:$0xf0]  ;;  %v3415_v42 = vld [vmem:[%s4785_s16 + $0x58] sm:$0xff] }
 0x158   : > { %v3150_v32 = vor.u32 %v3403_v31, %v3149_v29 }
 0x15a   : > { %2135 = vmatpush.bf16.msra.mxu0 %v3150_v32  ;;  %v3467_v32 = vld [vmem:[%s4847_s28] ss:$0 sm:$0xff] }
 0x15c   : > { %v1618_v34 = vpop.f32.mrf.mxu2 }
 0x15d   : > { %v1619_v52 = vadd.f32 %v1618_v34, %v1420_v46  ;;  %v3419_v34 = vld [vmem:[%s4785_s16 + $0x78] sm:$0xff] }
 0x15e   : > { %v1594_v37 = vpop.f32.mrf.mxu0  ;;  %2290 = vmatpush.bf16.msrb.mxu0 %v3411_v33  ;;  %2303 = vmatpush.bf16.msra.mxu1 %v3419_v34 }
 0x15f   : > { %v3418_v37 = vld [vmem:[%s4785_s16 + $0x70] sm:$0xff] }
 0x162   : > { %2291 = vmatpush.bf16.msrb.mxu0 %v3410_v36  ;;  %2304 = vmatpush.bf16.msra.mxu1 %v3418_v37 }
 0x164   : > { %v1620_v38 = vpop.f32.mrf.mxu2 }
 0x165   : > { %v3409_v38 = vld [vmem:[%s4785_s16 + $0x28] sm:$0xff] }
 0x166   : > { %v1842_v50 = vpop.f32.mrf.mxu0  ;;  %2292 = vmatpush.bf16.msrb.mxu0 %v3409_v38 }
 0x167   : > { %v1843_v63 = vadd.f32 %v1842_v50, %v1669_v60  ;;  %v3417_v50 = vld [vmem:[%s4785_s16 + $0x68] sm:$0xff] }
 0x168   : > { %2305 = vmatpush.bf16.msra.mxu1 %v3417_v50  ;;  %v3413_v60 = vld [vmem:[%s4785_s16 + $0x48] sm:$0xff] }
 0x16c   : > { %v1868_v39 = vpop.f32.mrf.mxu2  ;;  %2306 = vmatpush.bf16.msra.mxu1 %v3416_v40 }
 0x16d   : > { %v1869_v3 = vadd.f32 %v1868_v39, %v1670_v1  ;;  %v3408_v39 = vld [vmem:[%s4785_s16 + $0x20] sm:$0xff] }
 0x16e   : > { %v1844_v41 = vpop.f32.mrf.mxu0  ;;  %2293 = vmatpush.bf16.msrb.mxu0 %v3408_v39 }
 0x16f   : > { %v3407_v41 = vld [vmem:[%s4785_s16 + $0x18] sm:$0xff] }
 0x170   : > { %2307 = vmatpush.bf16.msra.mxu1 %v3415_v42 }
 0x172   : > { %2294 = vmatpush.bf16.msrb.mxu0 %v3407_v41 }
 0x174   : > { %v1870_v20 = vpop.f32.mrf.mxu2 }
 0x175   : > { %v3406_v20 = vld [vmem:[%s4785_s16 + $0x10] sm:$0xff] }
 0x176   : > { %v1605_v45 = vpop.f32.mrf.mxu1  ;;  %2295 = vmatpush.bf16.msrb.mxu0 %v3406_v20 }
 0x177   : > { %v1606_v47 = vadd.f32 %v1605_v45, %v1593_v44 }
 0x179   : > { %v1885_v49 = vmul.f32 %v1606_v47, %v1369_v24 }
 0x17b   : > { %v1887_v53 = vpack.c.bf16 %v1885_v49, %v1885_v49  ;;  %v3405_v49 = vld [vmem:[%s4785_s16 + $0x8] sm:$0xff] }
 0x17c   : > { %v1631_v54 = vpop.f32.mrf.mxu3  ;;  %2296 = vmatpush.bf16.msrb.mxu0 %v3405_v49 }
 0x17d   : > { %v1632_v56 = vadd.f32 %v1631_v54, %v1619_v52  ;;  %2047 = vmatmul.bf16.vlgmr.msrb.gmra.mxu1 %v1887_v53 }
 0x17e   : > { %v1607_v58 = vpop.f32.mrf.mxu1 }
 0x17f   : > { %v1886_v59 = vmul.f32 %v1632_v56, %v1382_v55  ;;  %v3414_v58 = vld [vmem:[%s4785_s16 + $0x50] sm:$0xff] }
 0x180   : > { %2308 = vmatpush.bf16.msra.mxu1 %v3414_v58 }
 0x181   : > { %v1888_v61 = vpack.c.bf16 %v1886_v59, %v1886_v59  ;;  %v3404_v59 = vld [vmem:[%s4785_s16] sm:$0xff] }
 0x182   : > { %2297 = vmatpush.bf16.msrb.mxu0 %v3404_v59 }
 0x183   : > { %2060 = vmatmul.bf16.vlgmr.msrb.gmra.mxu2 %v1888_v61  ;;  %v3412_v61 = vld [vmem:[%s4785_s16 + $0x40] sm:$0xff] }
 0x184   : > { %v1633_v62 = vpop.f32.mrf.mxu3  ;;  %2309 = vmatpush.bf16.msra.mxu1 %v3413_v60 }
 0x185   : > { %v3423_v62 = vld [vmem:[%s4788_s19 + $0x8] sm:$0xff] }
 0x186   : > { %v1855_v0 = vpop.f32.mrf.mxu1  ;;  %2345 = vmatpush.bf16.msra.mxu2 %v3423_v62 }
 0x187   : > { %v4630_v2 = vadd.f32 %v1855_v0, %v1843_v63  ;;  %v3421_v63 = vld [vmem:[%s4787_s18 + $0x8] sm:$0xff] }
 0x188   : > { %2310 = vmatpush.bf16.msra.mxu1 %v3412_v61 }
 0x18a   : > { %2346 = vmatpush.bf16.msra.mxu2 %v3422_v10 }
 0x18c   : > { %v1881_v4 = vpop.f32.mrf.mxu3 }
 0x18d   : > { %v4632_v5 = vadd.f32 %v1881_v4, %v1869_v3 }
 0x18e   : > { %v1857_v6 = vpop.f32.mrf.mxu1 }
 0x190   : > { %v1938_v35 = vpop.f32.mrf.mxu0 }
 0x191   : > { %v1942_v12 = vmul.f32 -1e+30, %v1938_v35 }
 0x193   : > { %3229 = vmatmul.msk.bf16.vlgmr.msra.gmra.mxu2 %vm1355_vm2, %v4235_v8 }
 0x194   : > { %v1883_v7 = vpop.f32.mrf.mxu3 }
 0x198   : > { %v1940_v9 = vpop.f32.mrf.mxu0 }
 0x1fa   : > { %v2048_v11 = vpop.f32.mrf.mxu1 }
 0x1fb   : > { %v2049_v14 = vadd.f32 %v2048_v11, %v1942_v12 }
 0x202   : > { %v2050_v13 = vpop.f32.mrf.mxu1 }
 0x206   : > { %v2061_v15 = vpop.f32.mrf.mxu2 }
 0x207   : > { %v2062_v16 = vadd.f32 %v2061_v15, %v2049_v14 }
 0x209   : > { %v2066_v17 = vsel %vm2065_vm6, %v2062_v16, -inf }
 0x20a   : > { %2067 = vmax.xlane.f32.xlu0 %v2066_v17 }
 0x20e   : > { %v2063_v18 = vpop.f32.mrf.mxu2 }
 0x27d   : > { %v2068_v19 = vpop.xlane.xlu0 %2067 }
 0x27e   : > { %v2069_v22 = vsub.f32 %v2062_v16, %v2068_v19  ;;  %v3425_v19 = vld [vmem:[%s4790_s21 + $0x8] sm:$0xff] }
 0x27f   : > { %2416 = vmatpush.bf16.msrb.mxu2 %v3425_v19 }
 0x280   : > { %v2070_v23 = vmul.f32 1.442695, %v2069_v22  ;;  %v2348_v22 = vpop.f32.mrf.mxu2 }
 0x282   : > { %3468 = vpow2.f32 %v2070_v23 }
 0x288   : > { %v3469_v25 = vpop.eup %3468  ;;  %v2350_v23 = vpop.f32.mrf.mxu2 }
 0x289   : > { %v2072_v26 = vpack.c.bf16 %v3469_v25, %v3469_v25 }
 0x28b   : > { %3146 = vmatmul.msk.bf16.vlgmr.msrb.gmra.mxu3 %vm2065_vm6, %v2072_v26 }
 0x28c   : > { %2373 = vmatpush.bf16.msrb.mxu3 %v3421_v63 }
 0x30e   : > { %v2093_v51 = vpop.f32.mrf.mxu3 }
 0x30f   : > { %3470 = vrcp.f32 %v2093_v51  ;;  %v2108_v46 = vand.u32 2147483648, %v2093_v51  ;;  %v2106_v48 = vand.u32 2147483647, %v2093_v51  ;;  %vm2102_vm8 = vweird.f32 %v2093_v51 }
 0x311   : > { %v2109_v53 = vor.u32 1.1754944e-38, %v2108_v46  ;;  %vm2107_vm10 = vcmp.eq.f32.partialorder %v2106_v48, 8.507059e+37 }
 0x315   : > { %v3471_v43 = vpop.eup %3470 }
 0x316   : > { %v2098_v44 = vmul.f32 %v3471_v43, %v2093_v51  ;;  %v2095_v45 = vpop.f32.mrf.mxu3  ;;  %vm2103_vm7 = vweird.f32 %v3471_v43 }
 0x317   : > { %vm2104_vm9 = vmor %vm2102_vm8, %vm2103_vm7 }
 0x318   : > { %v2099_v24 = vsub.f32 1.0, %v2098_v44 }
 0x31a   : > { %v2100_v47 = vmul.f32 %v3471_v43, %v2099_v24 }
 0x31c   : > { %v2101_v52 = vadd.f32 %v3471_v43, %v2100_v47 }
 0x31e   : > { %v2105_v54 = vsel %vm2104_vm9, %v3471_v43, %v2101_v52 }
 0x31f   : > { %v2110_v55 = vsel %vm2107_vm10, %v2109_v53, %v2105_v54 }
 0x320   : > { %v2111_v56 = vmul.f32 %v3469_v25, %v2110_v55  ;;  %v3424_v25 = vld [vmem:[%s4790_s21] sm:$0xff] }
 0x321   : > { %2417 = vmatpush.bf16.msrb.mxu2 %v3424_v25 }
 0x322   : > { %v2112_v57 = vpack.c.bf16 %v2111_v56, %v2111_v56 }
 0x324   : > { %3155 = vmatmul.msk.bf16.vlgmr.msra.gmra.mxu0 %vm2065_vm6, %v2112_v57  ;;  %3156 = vmatmul.msk.bf16.vlgmr.msra.gmra.mxu3 %vm2065_vm6, %v2112_v57 }
 0x3a1   : > { %v2137_v0 = vpop.f32.mrf.mxu0 }
 0x3a2   : > { %v2154_v1 = vmul.f32 %v2137_v0, %v4630_v2  ;;  %v3420_v2 = vld [vmem:[%s4787_s18] sm:$0xff] }
 0x3a3   : > { %2374 = vmatpush.bf16.msrb.mxu3 %v3420_v2 }
 0x3a4   : > { %v2156_v3 = vpack.c.bf16 %v2154_v1, %v2154_v1 }
 0x3a6   : > { %2298 = vmatmul.bf16.vlgmr.msrb.gmra.mxu0 %v2156_v3 }
 0x3a7   : > { %v2150_v4 = vpop.f32.mrf.mxu3 }
 0x3a8   : > { %v2155_v6 = vmul.f32 %v2150_v4, %v4632_v5  ;;  %v3465_v5 = vld [vmem:[%s4786_s17] ss:$0 sm:$0xff] }
 0x3a9   : > { %v2139_v7 = vpop.f32.mrf.mxu0 }
 0x3aa   : > { %v2157_v35 = vpack.c.bf16 %v2155_v6, %v2155_v6 }
 0x3ac   : > { %2311 = vmatmul.bf16.vlgmr.msra.gmra.mxu1 %v2157_v35 }
 0x3af   : > { %v2152_v9 = vpop.f32.mrf.mxu3 }
 0x423   : > { %v2299_v11 = vpop.f32.mrf.mxu0 }
 0x424   : > { %v2300_v12 = vadd.f32 %v3465_v5, %v2299_v11 }
 0x429   : > { %v2312_v13 = vpop.f32.mrf.mxu1 }
 0x42a   : > { %v2313_v14 = vadd.f32 %v2312_v13, %v2300_v12 }
 0x42b   : > { %v2301_v15 = vpop.f32.mrf.mxu0 }
 0x42c   : > { %v2316_v16 = vsel %vm771_vm3, 0.0, %v2313_v14 }
 0x42d   : > { %v2317_v17 = vmax.f32 %v2316_v16, 0.0 }
 0x42f   : > { %v2318_v18 = vpack.c.bf16 %v2317_v17, %v2317_v17 }
 0x431   : > { %v2314_v8 = vpop.f32.mrf.mxu1  ;;  %3238 = vmatmul.msk.bf16.vlgmr.msrb.gmra.mxu3 %vm1355_vm2, %v2318_v18 }
 0x4b4   : > { %v2376_v26 = vpop.f32.mrf.mxu3 }
 0x4b5   : > { %v2377_v27 = vadd.f32 %v2376_v26, %v2348_v22 }
 0x4b7   : > { %v2384_v28 = vadd.f32 %v3466_v21, %v2377_v27 }
 0x4b9   : > { %v2385_v29 = vmax.f32 %v2384_v28, 0.0 }
 0x4bb   : > { %v2386_v30 = vpack.c.bf16 %v2385_v29, %v2385_v29 }
 0x4bc   : > { %v2378_v31 = vpop.f32.mrf.mxu3 }
 0x4bd   : > { %3247 = vmatmul.msk.bf16.vlgmr.msrb.gmra.mxu2 %vm1355_vm2, %v2386_v30 }
 0x540   : > { %v2419_v33 = vpop.f32.mrf.mxu2 }
 0x541   : > { %v2420_v34 = vadd.f32 %v3467_v32, %v2419_v33 }
 0x543   : > { %2423 = vst.msk [vmem:[%s742_s29] sm:$0xff] %vm1355_vm2, %v2420_v34 }
 0x544   : > { %3499 = shalt.err (!%p3496_p3)
}
 0x545   : > { %3426 = dma.vmem_to_hbm [thread:$0]  (%p3694_p5), %s2438_s3, 128, %s2440_s0, %s2425_s6  }
 0x548   : > { %v2421_v36 = vpop.f32.mrf.mxu2 }
 0x549 PF: > { %s4848_s22 = sld [smem:[#allocation7_spill]] }
 0x54a   : > { %s4849_s2 = sld [smem:[#allocation5_spill]] }
 0x54f   : > { %p3432_p4 = scmp.ge.s32.totalorder %s4848_s22, 2 }
 0x550   : > { %s2451_s1 = sand.u32 1, %s4849_s2  }
 0x551   : > { %p3429_p7 = pnand %p3432_p4, %p3698_p6  ;;  %s2452_s28 = scalar_lea.sflag [#allocation3], %s2451_s1 }
 0x553   : > { %p3430_p8 = pneg %p3429_p7 }
 0x555   : > { %3517 = dma.done.wait (%p3430_p8), %s2452_s28, 128  }
 0x556   : > { %3519 = vsyncadd (%p3430_p8), %s2452_s28, 4294967168  ;;  %s4851_s25 = sld [smem:[#allocation9_spill]]  ;;  %s4854_s4 = smov %s3526_s30 }
 0x557   : > { %s4852_s8 = sld [smem:[#allocation6_spill]] }
 0x558   : > { %s4853_s24 = sld [smem:[#allocation10_spill]] }
 0x55c   : > { %p33_p9 = scmp.ge.s32.totalorder %s4851_s25, 4  }
 0x55d   : > { %s4855_s30 = smov %s4852_s8 }
 0x55e   :  { %35 = sbr.rel (!%p33_p9) target bundleno = 17 (0x11), region = 156 }
 0x563   :  { %2458 = vsyncpa [#allocation3], 1 }
 0x564   :  { %2460 = vsyncpa [#allocation3 + $0x1], 1 }

</bundles_post_ra>
